<compile_context>
chip_gen: v7x
topology: tpu7x:2x2x1
jax: 0.10.0
libtpu: 0.0.40
codegen_flags: <defaults>
</compile_context>

<pallas_src>
import functools

import jax
import jax.numpy as jnp
from jax.experimental import pallas as pl
from jax.experimental.pallas import tpu as pltpu

LN_EPS = 1e-5
LANE = 128


def _round_up(x, m):
    return (x + m - 1) // m * m


# --------------------------------------------------------------------------
# Kernel
# --------------------------------------------------------------------------
def _critic_kernel(obs_ref, act_ref,
                   wt_ref, tvec_ref,
                   w1h_ref, w1a_ref, b1_ref,
                   w2a_ref, w2b_ref, hvec_ref, b3_ref,
                   out_ref):
    """One batch tile: trunk (Linear+LN+Tanh) + two fused Q heads."""
    Hp = w2a_ref.shape[1]
    bf16 = jnp.bfloat16

    obs = obs_ref[...]                       # (TB, R)  f32
    act = act_ref[...]                       # (TB, A)  f32

    # ---- trunk: Linear -> LayerNorm -> Tanh (LN math in f32) --------------
    h0 = jnp.dot(obs.astype(bf16), wt_ref[...],
                 preferred_element_type=jnp.float32)            # (TB, Fp)
    bt = tvec_ref[0:1, :]
    gamma = tvec_ref[1:2, :]
    beta = tvec_ref[2:3, :]
    wmask = tvec_ref[3:4, :]                 # mask / true_feature_dim
    h0 = h0 + bt                             # padded lanes stay exactly 0
    mean = jnp.sum(h0 * wmask, axis=-1, keepdims=True)
    xc = h0 - mean
    var = jnp.sum(xc * xc * wmask, axis=-1, keepdims=True)
    h = jnp.tanh(xc * jax.lax.rsqrt(var + LN_EPS) * gamma + beta)  # pad lanes = 0

    # ---- both Q heads' first layer fused into one N = 2*Hp matmul ---------
    # concat([h, act]) @ W1  ==  h @ W1h + act @ W1a  (heads side-by-side in N)
    z1 = (jnp.dot(h.astype(bf16), w1h_ref[...],
                  preferred_element_type=jnp.float32)
          + jnp.dot(act.astype(bf16), w1a_ref[...],
                    preferred_element_type=jnp.float32)
          + b1_ref[...])
    z1 = jnp.maximum(z1, 0.0).astype(bf16)   # (TB, 2*Hp)
    z1a = z1[:, :Hp]
    z1b = z1[:, Hp:]

    z2a = jnp.maximum(
        jnp.dot(z1a, w2a_ref[...], preferred_element_type=jnp.float32)
        + hvec_ref[0:1, :], 0.0)
    z2b = jnp.maximum(
        jnp.dot(z1b, w2b_ref[...], preferred_element_type=jnp.float32)
        + hvec_ref[1:2, :], 0.0)

    # ---- final (H -> 1) layer as VPU multiply + lane reduction ------------
    q1 = jnp.sum(z2a * hvec_ref[2:3, :], axis=-1, keepdims=True) + b3_ref[0]
    q2 = jnp.sum(z2b * hvec_ref[3:4, :], axis=-1, keepdims=True) + b3_ref[1]

    # lane-dense output slab: lane 0 = q1, lane 1 = q2, rest = 0
    lane = jax.lax.broadcasted_iota(jnp.int32, out_ref.shape, 1)
    out_ref[...] = jnp.where(lane == 0, q1, 0.0) + jnp.where(lane == 1, q2, 0.0)


# --------------------------------------------------------------------------
# Wrapper
# --------------------------------------------------------------------------
@functools.partial(jax.jit, static_argnames=("block_b",))
def critic_forward(obs, action, kp, *, block_b=128):
    """obs: (B, repr_dim), action: (B, action_dim) -> (q1, q2), each (B, 1)."""
    B, R = obs.shape
    A = action.shape[1]
    Fp = kp["wt"].shape[1]
    Hp = kp["w2a"].shape[1]

    TB = min(block_b, _round_up(B, 8))       # batch tile, multiple of 8
    Bp = _round_up(B, TB)
    if Bp != B:
        obs = jnp.pad(obs, ((0, Bp - B), (0, 0)))
        action = jnp.pad(action, ((0, Bp - B), (0, 0)))
    nb = Bp // TB

    def resident(x):                          # weights: VMEM-resident across steps
        nd = x.ndim
        return pl.BlockSpec(x.shape, lambda i, _nd=nd: (0,) * _nd)

    in_specs = [
        pl.BlockSpec((TB, R), lambda i: (i, 0)),       # obs tile
        pl.BlockSpec((TB, A), lambda i: (i, 0)),       # action tile
        resident(kp["wt"]), resident(kp["tvec"]),
        resident(kp["w1h"]), resident(kp["w1a"]), resident(kp["b1"]),
        resident(kp["w2a"]), resident(kp["w2b"]), resident(kp["hvec"]),
        pl.BlockSpec(memory_space=pltpu.MemorySpace.SMEM),   # b3 scalars
    ]
    out_spec = pl.BlockSpec((TB, LANE), lambda i: (i, 0))

    flops = 2 * Bp * (R * Fp + (Fp + A) * 2 * Hp + 2 * Hp * Hp + 2 * Hp)
    bytes_accessed = int((obs.size + action.size + Bp * LANE) * 4
                         + sum(int(v.size) * v.dtype.itemsize
                               for v in kp.values()))
    cost = pl.CostEstimate(flops=int(flops), transcendentals=int(Bp * Fp),
                           bytes_accessed=bytes_accessed)

    out = pl.pallas_call(
        _critic_kernel,
        grid=(nb,),
        in_specs=in_specs,
        out_specs=out_spec,
        out_shape=jax.ShapeDtypeStruct((Bp, LANE), jnp.float32),
        compiler_params=pltpu.CompilerParams(
            dimension_semantics=("parallel",),
            vmem_limit_bytes=48 * 1024 * 1024),
        cost_estimate=cost,
    )(obs, action, kp["wt"], kp["tvec"], kp["w1h"], kp["w1a"], kp["b1"],
      kp["w2a"], kp["w2b"], kp["hvec"], kp["b3"])

    return out[:B, 0:1], out[:B, 1:2]


# --------------------------------------------------------------------------
# Parameter handling
# --------------------------------------------------------------------------
def init_params(key, repr_dim, action_dim, feature_dim, hidden_dim):
    """Synthetic f32 parameters, Linear weights stored (in_features, out_features)."""
    ks = jax.random.split(key, 20)

    def w(k, shape, scale=0.1):
        return (scale * jax.random.normal(k, shape)).astype(jnp.float32)

    p = {}
    p["wt"] = w(ks[0], (repr_dim, feature_dim))
    p["bt"] = w(ks[1], (1, feature_dim), 0.05)
    p["gamma"] = (1.0 + 0.1 * jax.random.normal(ks[2], (1, feature_dim))
                  ).astype(jnp.float32)
    p["beta"] = w(ks[3], (1, feature_dim), 0.05)
    for pre, off in (("q1", 4), ("q2", 11)):
        p[pre + "_w1h"] = w(ks[off + 0], (feature_dim, hidden_dim))
        p[pre + "_w1a"] = w(ks[off + 1], (action_dim, hidden_dim))
        p[pre + "_b1"] = w(ks[off + 2], (1, hidden_dim), 0.05)
        p[pre + "_w2"] = w(ks[off + 3], (hidden_dim, hidden_dim))
        p[pre + "_b2"] = w(ks[off + 4], (1, hidden_dim), 0.05)
        p[pre + "_w3"] = w(ks[off + 5], (hidden_dim, 1))
        p[pre + "_b3"] = w(ks[off + 6], (1, 1), 0.05)
    return p


def prepare_kernel_params(p):
    """Pad to 128-lane multiples, fuse the two heads' first layers, pack small
    vectors, cast matmul weights to bf16 (f32 accumulation stays in-kernel)."""
    F = p["wt"].shape[1]
    H = p["q1_w2"].shape[1]
    A = p["q1_w1a"].shape[0]
    Fp = _round_up(F, LANE)
    Hp = _round_up(H, LANE)
    bf16 = jnp.bfloat16

    wt = jnp.zeros((p["wt"].shape[0], Fp), jnp.float32).at[:, :F].set(p["wt"])

    tvec = jnp.zeros((4, Fp), jnp.float32)
    tvec = tvec.at[0, :F].set(p["bt"].reshape(-1))
    tvec = tvec.at[1, :F].set(p["gamma"].reshape(-1))
    tvec = tvec.at[2, :F].set(p["beta"].reshape(-1))
    tvec = tvec.at[3, :F].set(1.0 / F)          # mask / true feature_dim

    w1h = jnp.zeros((Fp, 2 * Hp), jnp.float32)
    w1h = w1h.at[:F, :H].set(p["q1_w1h"]).at[:F, Hp:Hp + H].set(p["q2_w1h"])
    w1a = jnp.zeros((A, 2 * Hp), jnp.float32)
    w1a = w1a.at[:, :H].set(p["q1_w1a"]).at[:, Hp:Hp + H].set(p["q2_w1a"])
    b1 = jnp.zeros((1, 2 * Hp), jnp.float32)
    b1 = b1.at[0, :H].set(p["q1_b1"].reshape(-1))
    b1 = b1.at[0, Hp:Hp + H].set(p["q2_b1"].reshape(-1))

    w2a = jnp.zeros((Hp, Hp), jnp.float32).at[:H, :H].set(p["q1_w2"])
    w2b = jnp.zeros((Hp, Hp), jnp.float32).at[:H, :H].set(p["q2_w2"])

    hvec = jnp.zeros((4, Hp), jnp.float32)
    hvec = hvec.at[0, :H].set(p["q1_b2"].reshape(-1))
    hvec = hvec.at[1, :H].set(p["q2_b2"].reshape(-1))
    hvec = hvec.at[2, :H].set(p["q1_w3"].reshape(-1))
    hvec = hvec.at[3, :H].set(p["q2_w3"].reshape(-1))

    b3 = jnp.stack([p["q1_b3"].reshape(()), p["q2_b3"].reshape(())]
                   ).astype(jnp.float32)

    return dict(wt=wt.astype(bf16), tvec=tvec,
                w1h=w1h.astype(bf16), w1a=w1a.astype(bf16), b1=b1,
                w2a=w2a.astype(bf16), w2b=w2b.astype(bf16),
                hvec=hvec, b3=b3)


# --------------------------------------------------------------------------
# Pure-JAX reference (same bf16-matmul / f32-accumulate precision as kernel)
# --------------------------------------------------------------------------
def critic_reference(obs, action, p):
    def mm(x, w):
        return jnp.dot(x.astype(jnp.bfloat16), w.astype(jnp.bfloat16),
                       preferred_element_type=jnp.float32)

    h0 = mm(obs, p["wt"]) + p["bt"]
    mean = jnp.mean(h0, axis=-1, keepdims=True)
    var = jnp.mean((h0 - mean) ** 2, axis=-1, keepdims=True)
    h = jnp.tanh((h0 - mean) * jax.lax.rsqrt(var + LN_EPS)
                 * p["gamma"] + p["beta"])

    def head(pre):
        z1 = jax.nn.relu(mm(h, p[pre + "_w1h"]) + mm(action, p[pre + "_w1a"])
                         + p[pre + "_b1"])
        z2 = jax.nn.relu(mm(z1, p[pre + "_w2"]) + p[pre + "_b2"])
        return z2 @ p[pre + "_w3"] + p[pre + "_b3"]   # final layer in f32

    return head("q1"), head("q2")


# --------------------------------------------------------------------------
if __name__ == "__main__":
    B, repr_dim, action_dim = 256, 128, 6
    feature_dim, hidden_dim = 50, 64          # deliberately non-128-aligned

    key = jax.random.PRNGKey(0)
    k_obs, k_act, k_par = jax.random.split(key, 3)
    obs = jax.random.normal(k_obs, (B, repr_dim), jnp.float32)
    action = jax.random.normal(k_act, (B, action_dim), jnp.float32)

    params = init_params(k_par, repr_dim, action_dim, feature_dim, hidden_dim)
    kparams = prepare_kernel_params(params)

    q1, q2 = jax.block_until_ready(critic_forward(obs, action, kparams))

    q1_ref, q2_ref = critic_reference(obs, action, params)
    assert q1.shape == (B, 1) and q2.shape == (B, 1)
    assert jnp.allclose(q1, q1_ref, atol=2e-2, rtol=2e-2), \
        float(jnp.max(jnp.abs(q1 - q1_ref)))
    assert jnp.allclose(q2, q2_ref, atol=2e-2, rtol=2e-2), \
        float(jnp.max(jnp.abs(q2 - q2_ref)))

    print("KERNEL_OK")
</pallas_src>

<mosaic_0001>
module attributes {stable_mosaic.version = 11 : i64} {
  func.func @_critic_kernel(%arg0: i32, %arg1: memref<128x128xf32, #tpu.memory_space<vmem>>, %arg2: memref<128x6xf32, #tpu.memory_space<vmem>>, %arg3: memref<128x128xbf16, #tpu.memory_space<vmem>>, %arg4: memref<4x128xf32, #tpu.memory_space<vmem>>, %arg5: memref<128x256xbf16, #tpu.memory_space<vmem>>, %arg6: memref<6x256xbf16, #tpu.memory_space<vmem>>, %arg7: memref<1x256xf32, #tpu.memory_space<vmem>>, %arg8: memref<128x128xbf16, #tpu.memory_space<vmem>>, %arg9: memref<128x128xbf16, #tpu.memory_space<vmem>>, %arg10: memref<4x128xf32, #tpu.memory_space<vmem>>, %arg11: memref<2xf32, #tpu.memory_space<smem>>, %arg12: memref<128x128xf32, #tpu.memory_space<vmem>>) attributes {dimension_semantics = [#tpu.dimension_semantics<parallel>], iteration_bounds = array<i64: 2>, scalar_prefetch = 0 : i64, scratch_operands = 0 : i64, tpu.core_type = #tpu.core_type<tc>, window_params = [{transform_indices = @transform_0, window_bounds = array<i64: 128, 128>}, {transform_indices = @transform_1, window_bounds = array<i64: 128, 6>}, {pipeline_mode = #tpu.pipeline_mode<synchronous>, transform_indices = @transform_2, window_bounds = array<i64: 128, 128>}, {pipeline_mode = #tpu.pipeline_mode<synchronous>, transform_indices = @transform_3, window_bounds = array<i64: 4, 128>}, {pipeline_mode = #tpu.pipeline_mode<synchronous>, transform_indices = @transform_4, window_bounds = array<i64: 128, 256>}, {pipeline_mode = #tpu.pipeline_mode<synchronous>, transform_indices = @transform_5, window_bounds = array<i64: 6, 256>}, {pipeline_mode = #tpu.pipeline_mode<synchronous>, transform_indices = @transform_6, window_bounds = array<i64: 1, 256>}, {pipeline_mode = #tpu.pipeline_mode<synchronous>, transform_indices = @transform_7, window_bounds = array<i64: 128, 128>}, {pipeline_mode = #tpu.pipeline_mode<synchronous>, transform_indices = @transform_8, window_bounds = array<i64: 128, 128>}, {pipeline_mode = #tpu.pipeline_mode<synchronous>, transform_indices = @transform_9, window_bounds = array<i64: 4, 128>}, {transform_indices = @transform_10, window_bounds = array<i64: 2>}, {transform_indices = @transform_11, window_bounds = array<i64: 128, 128>}]} {
    %c0 = arith.constant 0 : index
    %c0_0 = arith.constant 0 : index
    %0 = vector.load %arg1[%c0, %c0_0] : memref<128x128xf32, #tpu.memory_space<vmem>>, vector<128x128xf32>
    %c0_1 = arith.constant 0 : index
    %c0_2 = arith.constant 0 : index
    %1 = vector.load %arg2[%c0_1, %c0_2] : memref<128x6xf32, #tpu.memory_space<vmem>>, vector<128x6xf32>
    %2 = arith.truncf %0 : vector<128x128xf32> to vector<128x128xbf16>
    %c0_3 = arith.constant 0 : index
    %c0_4 = arith.constant 0 : index
    %3 = vector.load %arg3[%c0_3, %c0_4] : memref<128x128xbf16, #tpu.memory_space<vmem>>, vector<128x128xbf16>
    %cst = arith.constant dense<0.000000e+00> : vector<128x128xf32>
    %4 = tpu.matmul %2, %3, %cst {dimension_numbers = #tpu.dot_dimension_numbers<[1], [0], [0], [1], [0, 0, 1, 1], [], []>} : vector<128x128xbf16>, vector<128x128xbf16>, vector<128x128xf32> -> vector<128x128xf32>
    %c0_5 = arith.constant 0 : index
    %c0_6 = arith.constant 0 : index
    %5 = vector.load %arg4[%c0_5, %c0_6] : memref<4x128xf32, #tpu.memory_space<vmem>>, vector<1x128xf32>
    %c1 = arith.constant 1 : index
    %c0_7 = arith.constant 0 : index
    %6 = vector.load %arg4[%c1, %c0_7] : memref<4x128xf32, #tpu.memory_space<vmem>>, vector<1x128xf32>
    %c2 = arith.constant 2 : index
    %c0_8 = arith.constant 0 : index
    %7 = vector.load %arg4[%c2, %c0_8] : memref<4x128xf32, #tpu.memory_space<vmem>>, vector<1x128xf32>
    %c3 = arith.constant 3 : index
    %c0_9 = arith.constant 0 : index
    %8 = vector.load %arg4[%c3, %c0_9] : memref<4x128xf32, #tpu.memory_space<vmem>>, vector<1x128xf32>
    %9 = vector.broadcast %5 : vector<1x128xf32> to vector<128x128xf32>
    %10 = arith.addf %4, %9 : vector<128x128xf32>
    %11 = vector.broadcast %8 : vector<1x128xf32> to vector<128x128xf32>
    %12 = arith.mulf %10, %11 : vector<128x128xf32>
    %cst_10 = arith.constant dense<0.000000e+00> : vector<128xf32>
    %13 = vector.multi_reduction <add>, %12, %cst_10 [1] : vector<128x128xf32> to vector<128xf32>
    %14 = vector.shape_cast %13 : vector<128xf32> to vector<128x1xf32>
    %15 = vector.broadcast %14 : vector<128x1xf32> to vector<128x128xf32>
    %16 = arith.subf %10, %15 : vector<128x128xf32>
    %17 = arith.mulf %16, %16 : vector<128x128xf32>
    %18 = vector.broadcast %8 : vector<1x128xf32> to vector<128x128xf32>
    %19 = arith.mulf %17, %18 : vector<128x128xf32>
    %cst_11 = arith.constant dense<0.000000e+00> : vector<128xf32>
    %20 = vector.multi_reduction <add>, %19, %cst_11 [1] : vector<128x128xf32> to vector<128xf32>
    %21 = vector.shape_cast %20 : vector<128xf32> to vector<128x1xf32>
    %cst_12 = arith.constant 9.99999974E-6 : f32
    %22 = vector.broadcast %cst_12 : f32 to vector<128x1xf32>
    %23 = arith.addf %21, %22 : vector<128x1xf32>
    %24 = math.rsqrt %23 : vector<128x1xf32>
    %25 = vector.broadcast %24 : vector<128x1xf32> to vector<128x128xf32>
    %26 = arith.mulf %16, %25 : vector<128x128xf32>
    %27 = vector.broadcast %6 : vector<1x128xf32> to vector<128x128xf32>
    %28 = arith.mulf %26, %27 : vector<128x128xf32>
    %29 = vector.broadcast %7 : vector<1x128xf32> to vector<128x128xf32>
    %30 = arith.addf %28, %29 : vector<128x128xf32>
    %31 = math.tanh %30 : vector<128x128xf32>
    %32 = arith.truncf %31 : vector<128x128xf32> to vector<128x128xbf16>
    %c0_13 = arith.constant 0 : index
    %c0_14 = arith.constant 0 : index
    %33 = vector.load %arg5[%c0_13, %c0_14] : memref<128x256xbf16, #tpu.memory_space<vmem>>, vector<128x256xbf16>
    %cst_15 = arith.constant dense<0.000000e+00> : vector<128x256xf32>
    %34 = tpu.matmul %32, %33, %cst_15 {dimension_numbers = #tpu.dot_dimension_numbers<[1], [0], [0], [1], [0, 0, 1, 1], [], []>} : vector<128x128xbf16>, vector<128x256xbf16>, vector<128x256xf32> -> vector<128x256xf32>
    %35 = arith.truncf %1 : vector<128x6xf32> to vector<128x6xbf16>
    %c0_16 = arith.constant 0 : index
    %c0_17 = arith.constant 0 : index
    %36 = vector.load %arg6[%c0_16, %c0_17] : memref<6x256xbf16, #tpu.memory_space<vmem>>, vector<6x256xbf16>
    %cst_18 = arith.constant dense<0.000000e+00> : vector<128x256xf32>
    %37 = tpu.matmul %35, %36, %cst_18 {dimension_numbers = #tpu.dot_dimension_numbers<[1], [0], [0], [1], [0, 0, 1, 1], [], []>} : vector<128x6xbf16>, vector<6x256xbf16>, vector<128x256xf32> -> vector<128x256xf32>
    %38 = arith.addf %34, %37 : vector<128x256xf32>
    %c0_19 = arith.constant 0 : index
    %c0_20 = arith.constant 0 : index
    %39 = vector.load %arg7[%c0_19, %c0_20] : memref<1x256xf32, #tpu.memory_space<vmem>>, vector<1x256xf32>
    %40 = vector.broadcast %39 : vector<1x256xf32> to vector<128x256xf32>
    %41 = arith.addf %38, %40 : vector<128x256xf32>
    %cst_21 = arith.constant 0.000000e+00 : f32
    %42 = vector.broadcast %cst_21 : f32 to vector<128x256xf32>
    %43 = arith.maximumf %41, %42 : vector<128x256xf32>
    %44 = arith.truncf %43 : vector<128x256xf32> to vector<128x256xbf16>
    %45 = vector.extract_strided_slice %44 {offsets = [0, 0], sizes = [128, 128], strides = [1, 1]} : vector<128x256xbf16> to vector<128x128xbf16>
    %46 = vector.extract_strided_slice %44 {offsets = [0, 128], sizes = [128, 128], strides = [1, 1]} : vector<128x256xbf16> to vector<128x128xbf16>
    %c0_22 = arith.constant 0 : index
    %c0_23 = arith.constant 0 : index
    %47 = vector.load %arg8[%c0_22, %c0_23] : memref<128x128xbf16, #tpu.memory_space<vmem>>, vector<128x128xbf16>
    %cst_24 = arith.constant dense<0.000000e+00> : vector<128x128xf32>
    %48 = tpu.matmul %45, %47, %cst_24 {dimension_numbers = #tpu.dot_dimension_numbers<[1], [0], [0], [1], [0, 0, 1, 1], [], []>} : vector<128x128xbf16>, vector<128x128xbf16>, vector<128x128xf32> -> vector<128x128xf32>
    %c0_25 = arith.constant 0 : index
    %c0_26 = arith.constant 0 : index
    %49 = vector.load %arg10[%c0_25, %c0_26] : memref<4x128xf32, #tpu.memory_space<vmem>>, vector<1x128xf32>
    %50 = vector.broadcast %49 : vector<1x128xf32> to vector<128x128xf32>
    %51 = arith.addf %48, %50 : vector<128x128xf32>
    %cst_27 = arith.constant 0.000000e+00 : f32
    %52 = vector.broadcast %cst_27 : f32 to vector<128x128xf32>
    %53 = arith.maximumf %51, %52 : vector<128x128xf32>
    %c0_28 = arith.constant 0 : index
    %c0_29 = arith.constant 0 : index
    %54 = vector.load %arg9[%c0_28, %c0_29] : memref<128x128xbf16, #tpu.memory_space<vmem>>, vector<128x128xbf16>
    %cst_30 = arith.constant dense<0.000000e+00> : vector<128x128xf32>
    %55 = tpu.matmul %46, %54, %cst_30 {dimension_numbers = #tpu.dot_dimension_numbers<[1], [0], [0], [1], [0, 0, 1, 1], [], []>} : vector<128x128xbf16>, vector<128x128xbf16>, vector<128x128xf32> -> vector<128x128xf32>
    %c1_31 = arith.constant 1 : index
    %c0_32 = arith.constant 0 : index
    %56 = vector.load %arg10[%c1_31, %c0_32] : memref<4x128xf32, #tpu.memory_space<vmem>>, vector<1x128xf32>
    %57 = vector.broadcast %56 : vector<1x128xf32> to vector<128x128xf32>
    %58 = arith.addf %55, %57 : vector<128x128xf32>
    %cst_33 = arith.constant 0.000000e+00 : f32
    %59 = vector.broadcast %cst_33 : f32 to vector<128x128xf32>
    %60 = arith.maximumf %58, %59 : vector<128x128xf32>
    %c2_34 = arith.constant 2 : index
    %c0_35 = arith.constant 0 : index
    %61 = vector.load %arg10[%c2_34, %c0_35] : memref<4x128xf32, #tpu.memory_space<vmem>>, vector<1x128xf32>
    %62 = vector.broadcast %61 : vector<1x128xf32> to vector<128x128xf32>
    %63 = arith.mulf %53, %62 : vector<128x128xf32>
    %cst_36 = arith.constant dense<0.000000e+00> : vector<128xf32>
    %64 = vector.multi_reduction <add>, %63, %cst_36 [1] : vector<128x128xf32> to vector<128xf32>
    %65 = vector.shape_cast %64 : vector<128xf32> to vector<128x1xf32>
    %c0_37 = arith.constant 0 : index
    %66 = memref.load %arg11[%c0_37] : memref<2xf32, #tpu.memory_space<smem>>
    %67 = vector.broadcast %66 : f32 to vector<128x1xf32>
    %68 = arith.addf %65, %67 : vector<128x1xf32>
    %c3_38 = arith.constant 3 : index
    %c0_39 = arith.constant 0 : index
    %69 = vector.load %arg10[%c3_38, %c0_39] : memref<4x128xf32, #tpu.memory_space<vmem>>, vector<1x128xf32>
    %70 = vector.broadcast %69 : vector<1x128xf32> to vector<128x128xf32>
    %71 = arith.mulf %60, %70 : vector<128x128xf32>
    %cst_40 = arith.constant dense<0.000000e+00> : vector<128xf32>
    %72 = vector.multi_reduction <add>, %71, %cst_40 [1] : vector<128x128xf32> to vector<128xf32>
    %73 = vector.shape_cast %72 : vector<128xf32> to vector<128x1xf32>
    %c1_41 = arith.constant 1 : index
    %74 = memref.load %arg11[%c1_41] : memref<2xf32, #tpu.memory_space<smem>>
    %75 = vector.broadcast %74 : f32 to vector<128x1xf32>
    %76 = arith.addf %73, %75 : vector<128x1xf32>
    %77 = tpu.iota {dimensions = array<i32: 1>} : vector<128x128xi32>
    %c0_i32 = arith.constant 0 : i32
    %78 = vector.broadcast %c0_i32 : i32 to vector<128x128xi32>
    %79 = arith.cmpi eq, %77, %78 : vector<128x128xi32>
    %cst_42 = arith.constant 0.000000e+00 : f32
    %80 = vector.shape_cast %68 : vector<128x1xf32> to vector<128x1xf32>
    %81 = vector.broadcast %80 : vector<128x1xf32> to vector<128x128xf32>
    %82 = vector.broadcast %cst_42 : f32 to vector<128x128xf32>
    %83 = arith.select %79, %81, %82 : vector<128x128xi1>, vector<128x128xf32>
    %c1_i32 = arith.constant 1 : i32
    %84 = vector.broadcast %c1_i32 : i32 to vector<128x128xi32>
    %85 = arith.cmpi eq, %77, %84 : vector<128x128xi32>
    %cst_43 = arith.constant 0.000000e+00 : f32
    %86 = vector.shape_cast %76 : vector<128x1xf32> to vector<128x1xf32>
    %87 = vector.broadcast %86 : vector<128x1xf32> to vector<128x128xf32>
    %88 = vector.broadcast %cst_43 : f32 to vector<128x128xf32>
    %89 = arith.select %85, %87, %88 : vector<128x128xi1>, vector<128x128xf32>
    %90 = arith.addf %83, %89 : vector<128x128xf32>
    %c0_44 = arith.constant 0 : index
    %c0_45 = arith.constant 0 : index
    %91 = vector.load %arg12[%c0_44, %c0_45] : memref<128x128xf32, #tpu.memory_space<vmem>>, vector<128x128xf32>
    tpu.vector_store %arg12[%c0_44, %c0_45], %90 {strides = array<i32>} : memref<128x128xf32, #tpu.memory_space<vmem>>, vector<128x128xf32>,
    return
  }
  func.func @transform_0(%arg0: i32) -> (i32, i32) {
    %c0_i32 = arith.constant 0 : i32
    %c0_i32_0 = arith.constant 0 : i32
    return %arg0, %c0_i32 : i32, i32
  }
  func.func @transform_1(%arg0: i32) -> (i32, i32) {
    %c0_i32 = arith.constant 0 : i32
    %c0_i32_0 = arith.constant 0 : i32
    return %arg0, %c0_i32 : i32, i32
  }
  func.func @transform_2(%arg0: i32) -> (i32, i32) {
    %c0_i32 = arith.constant 0 : i32
    %c0_i32_0 = arith.constant 0 : i32
    %c0_i32_1 = arith.constant 0 : i32
    return %c0_i32, %c0_i32_0 : i32, i32
  }
  func.func @transform_3(%arg0: i32) -> (i32, i32) {
    %c0_i32 = arith.constant 0 : i32
    %c0_i32_0 = arith.constant 0 : i32
    %c0_i32_1 = arith.constant 0 : i32
    return %c0_i32, %c0_i32_0 : i32, i32
  }
  func.func @transform_4(%arg0: i32) -> (i32, i32) {
    %c0_i32 = arith.constant 0 : i32
    %c0_i32_0 = arith.constant 0 : i32
    %c0_i32_1 = arith.constant 0 : i32
    return %c0_i32, %c0_i32_0 : i32, i32
  }
  func.func @transform_5(%arg0: i32) -> (i32, i32) {
    %c0_i32 = arith.constant 0 : i32
    %c0_i32_0 = arith.constant 0 : i32
    %c0_i32_1 = arith.constant 0 : i32
    return %c0_i32, %c0_i32_0 : i32, i32
  }
  func.func @transform_6(%arg0: i32) -> (i32, i32) {
    %c0_i32 = arith.constant 0 : i32
    %c0_i32_0 = arith.constant 0 : i32
    %c0_i32_1 = arith.constant 0 : i32
    return %c0_i32, %c0_i32_0 : i32, i32
  }
  func.func @transform_7(%arg0: i32) -> (i32, i32) {
    %c0_i32 = arith.constant 0 : i32
    %c0_i32_0 = arith.constant 0 : i32
    %c0_i32_1 = arith.constant 0 : i32
    return %c0_i32, %c0_i32_0 : i32, i32
  }
  func.func @transform_8(%arg0: i32) -> (i32, i32) {
    %c0_i32 = arith.constant 0 : i32
    %c0_i32_0 = arith.constant 0 : i32
    %c0_i32_1 = arith.constant 0 : i32
    return %c0_i32, %c0_i32_0 : i32, i32
  }
  func.func @transform_9(%arg0: i32) -> (i32, i32) {
    %c0_i32 = arith.constant 0 : i32
    %c0_i32_0 = arith.constant 0 : i32
    %c0_i32_1 = arith.constant 0 : i32
    return %c0_i32, %c0_i32_0 : i32, i32
  }
  func.func @transform_10(%arg0: i32) -> i32 {
    %c0_i32 = arith.constant 0 : i32
    %c0_i32_0 = arith.constant 0 : i32
    return %c0_i32 : i32
  }
  func.func @transform_11(%arg0: i32) -> (i32, i32) {
    %c0_i32 = arith.constant 0 : i32
    %c0_i32_0 = arith.constant 0 : i32
    return %arg0, %c0_i32 : i32, i32
  }
}

</mosaic_0001>

<bundles_post_ra>
// kernel: critic_forward.1
= control target key start
LH: loop header
LB: loop body
LE: loop exit
PB: predicated region body
PF: predicated region fallthrough
CT: control target
= control target key end

     0   :  { %s3498_s0 = inlined_call_operand.vmem [shape: f32[256,128], index: 0, kind: input, shape index: {}]   ;;  %s3499_s1 = inlined_call_operand.vmem [shape: f32[256,6], index: 1, kind: input, shape index: {}]   ;;  %s3500_s2 = inlined_call_operand.hbm [shape: bf16[128,128], index: 2, kind: input, shape index: {}]   ;;  %s3501_s3 = inlined_call_operand.vmem [shape: f32[4,128], index: 3, kind: input, shape index: {}]   ;;  %s3502_s4 = inlined_call_operand.hbm [shape: bf16[128,256], index: 4, kind: input, shape index: {}]   ;;  %s3503_s5 = inlined_call_operand.vmem [shape: bf16[6,256], index: 5, kind: input, shape index: {}]   ;;  %s3504_s6 = inlined_call_operand.vmem [shape: f32[1,256], index: 6, kind: input, shape index: {}]   ;;  %s3505_s7 = inlined_call_operand.hbm [shape: bf16[128,128], index: 7, kind: input, shape index: {}]   ;;  %s3506_s8 = inlined_call_operand.hbm [shape: bf16[128,128], index: 8, kind: input, shape index: {}]   ;;  %s3507_s9 = inlined_call_operand.vmem [shape: f32[4,128], index: 9, kind: input, shape index: {}]   ;;  %s3508_s10 = inlined_call_operand.vmem [shape: f32[2], index: 10, kind: input, shape index: {}]   ;;  %s3509_s11 = inlined_call_operand.vmem [shape: f32[256,128], index: 11, kind: output, shape index: {}]  }
   0x1   :  { %3514 = sst [smem:[#allocation15_spill]] %s3502_s4 }
   0x2   :  { %16 = vsyncpa [#allocation3], 0 }
   0x3   :  { %17 = vsyncpa [#allocation6], 0 }
   0x4   :  { %18 = vsyncpa [#allocation9], 0 }
   0x5   :  { %19 = vsyncpa [#allocation4], 0  ;;  %s2752_s17 = smov 0  }
   0x6 LB: > { %s2682_s18 = smov [#allocation5]   ;;  %s3510_s20 = sadd.s32 4294967295, %s2680_s17   ;;  %s2680_s17 = sphi %s2752_s17, %s25_s17  }
   0x7   : > { %s325_s19 = sshll.u32 %s2682_s18, 4  ;;  %p2096_p0 = scmp.ge.s32.totalorder %s2680_s17, 1  ;;  %s2766_s19 = int_to_ptr.vmem [resolvable:$true] %s325_s19 }
   0x8   : > { %p297_p1 = scmp.lt.s32.totalorder %s2680_s17, 3  ;;  %p2762_p2 = scmp.eq.s32.totalorder %s3510_s20, 0 }
   0x9   : > { %s2683_s23 = smov [#allocation2]   ;;  %s2684_s26 = smov [#allocation7]  }
   0xa   : > { %s3515_s21 = scalar_select %p2762_p2, 1, 0 }
   0xb   : > { %p2768_p3 = pnand %p2096_p0, %p297_p1  ;;  %s309_s24 = sshll.u32 %s2683_s23, 4  ;;  %s2774_s24 = int_to_ptr.vmem [resolvable:$true] %s309_s24 }
   0xc   : > { %s2782_s27 = sshll.u32 %s2684_s26, 4  ;;  %s3518_s4 = sld [smem:[#allocation15_spill]]  ;;  %s345_s27 = int_to_ptr.vmem [resolvable:$true] %s2782_s27 }
   0xd   : > { %s3516_s22 = scalar_select %p2768_p3, 1, 0 }
   0xe   : > { %p2373_p4 = pneg %p2768_p3 }
  0x10   : > { %p2778_p5 = pnand %p2762_p2, %p2373_p4 }
  0x12   : > { %s2531_s30 = scalar_lea.hbm %s3518_s4, 2048  ;;  %p2792_p7 = pneg %p2778_p5 }
  0x13   : > { %p2532_p6 = scmp.ne.s32.totalorder %s3518_s4, %s2531_s30  ;;  %p2538_p10 = scmp.lt.u32.totalorder %s2531_s30, %s3518_s4 }
  0x15   : > { %p2534_p8 = pnand %p2792_p7, %p2532_p6 }
  0x17   : > { %p2535_p9 = pneg %p2534_p8 }
  0x19   : > { %p2540_p11 = pnand %p2538_p10, %p2535_p9 }
  0x1b   : > { %2543 = shalt.err (!%p2540_p11)
}
  0x1c   : > { %s2544_s18 = scalar_lea.vmem %s2766_s19, 2048  ;;  %p2552_p1 = scmp.lt.s32.totalorder %s2766_s19, %s2766_s19 }
  0x1d   : > { %p2545_p12 = scmp.ne.s32.totalorder %s2766_s19, %s2544_s18  ;;  %p2553_p4 = scmp.lt.s32.totalorder %s2544_s18, %s2544_s18 }
  0x1f   : > { %p2547_p13 = pnand %p2545_p12, %p2792_p7  ;;  %p2554_p6 = por %p2553_p4, %p2552_p1 }
  0x21   : > { %p2548_p0 = pneg %p2547_p13 }
  0x23   : > { %p2555_p8 = pnand %p2554_p6, %p2548_p0 }
  0x25   : > { %2558 = shalt.err (!%p2555_p8)
}
  0x26   : > { %s2685_s23 = smov 128   ;;  %s2686_s26 = smov 8  }
  0x27   : > { %2379 = dma.hbm_to_vmem [thread:$0]  (!%p2778_p5), %s3518_s4, 2048, %s2766_s19, [#allocation6], %s2685_s23, %s2685_s23, %s2686_s26  }
  0x28   : > { %s2559_s13 = scalar_lea.hbm %s3500_s2, 1024 }
  0x29   : > { %p2560_p9 = scmp.ne.s32.totalorder %s3500_s2, %s2559_s13  ;;  %p2566_p12 = scmp.lt.u32.totalorder %s2559_s13, %s3500_s2 }
  0x2b   : > { %p2562_p10 = pnand %p2560_p9, %p2792_p7 }
  0x2d   : > { %p2563_p11 = pneg %p2562_p10 }
  0x2f   : > { %p2568_p13 = pnand %p2566_p12, %p2563_p11 }
  0x31   : > { %2571 = shalt.err (!%p2568_p13)
}
  0x32   : > { %s2572_s19 = scalar_lea.vmem %s2774_s24, 1024  ;;  %p2580_p6 = scmp.lt.s32.totalorder %s2774_s24, %s2774_s24 }
  0x33   : > { %p2573_p0 = scmp.ne.s32.totalorder %s2774_s24, %s2572_s19  ;;  %p2581_p8 = scmp.lt.s32.totalorder %s2572_s19, %s2572_s19 }
  0x35   : > { %p2575_p1 = pnand %p2573_p0, %p2792_p7  ;;  %p2582_p9 = por %p2581_p8, %p2580_p6 }
  0x37   : > { %p2576_p4 = pneg %p2575_p1 }
  0x39   : > { %p2583_p10 = pnand %p2582_p9, %p2576_p4 }
  0x3b   : > { %2586 = shalt.err (!%p2583_p10)
}
  0x3c   : > { %s2687_s23 = smov 64   ;;  %s2688_s20 = smov 4  }
  0x3d   : > { %2376 = dma.hbm_to_vmem [thread:$0]  (!%p2778_p5), %s3500_s2, 1024, %s2774_s24, [#allocation3], %s2687_s23, %s2687_s23, %s2688_s20  }
  0x3e   : > { %s2689_s29 = smov [#allocation8]   ;;  %s2587_s15 = scalar_lea.hbm %s3505_s7, 1024 }
  0x3f   : > { %s357_s30 = sshll.u32 %s2689_s29, 4  ;;  %p2588_p11 = scmp.ne.s32.totalorder %s3505_s7, %s2587_s15  ;;  %s358_s30 = int_to_ptr.vmem [resolvable:$true] %s357_s30 }
  0x40   : > { %p2594_p0 = scmp.lt.u32.totalorder %s2587_s15, %s3505_s7 }
  0x41   : > { %p2590_p12 = pnand %p2588_p11, %p2792_p7 }
  0x43   : > { %p2591_p13 = pneg %p2590_p12 }
  0x45   : > { %p2596_p1 = pnand %p2594_p0, %p2591_p13 }
  0x47   : > { %2599 = shalt.err (!%p2596_p1)
}
  0x48   : > { %s2600_s24 = scalar_lea.vmem %s345_s27, 1024  ;;  %p2608_p9 = scmp.lt.s32.totalorder %s345_s27, %s345_s27 }
  0x49   : > { %p2601_p4 = scmp.ne.s32.totalorder %s345_s27, %s2600_s24  ;;  %p2609_p10 = scmp.lt.s32.totalorder %s2600_s24, %s2600_s24 }
  0x4b   : > { %p2603_p6 = pnand %p2601_p4, %p2792_p7  ;;  %p2610_p2 = por %p2609_p10, %p2608_p9 }
  0x4d   : > { %p2604_p8 = pneg %p2603_p6 }
  0x4f   : > { %p2611_p3 = pnand %p2610_p2, %p2604_p8 }
  0x51   : > { %2614 = shalt.err (!%p2611_p3)
}
  0x52   : > { %2382 = dma.hbm_to_vmem [thread:$0]  (!%p2778_p5), %s3505_s7, 1024, %s345_s27, [#allocation6], %s2687_s23, %s2687_s23, %s2688_s20  }
  0x53   : > { %s374_s12 = sshll.u32 %s3508_s10, 4  ;;  %s2615_s16 = scalar_lea.hbm %s3506_s8, 1024  ;;  %s375_s12 = int_to_ptr.vmem [resolvable:$true] %s374_s12 }
  0x54   : > { %p2616_p2 = scmp.ne.s32.totalorder %s3506_s8, %s2615_s16  ;;  %p2622_p12 = scmp.lt.u32.totalorder %s2615_s16, %s3506_s8 }
  0x56   : > { %p2618_p3 = pnand %p2616_p2, %p2792_p7 }
  0x58   : > { %p2619_p11 = pneg %p2618_p3 }
  0x5a   : > { %p2624_p13 = pnand %p2622_p12, %p2619_p11 }
  0x5c   : > { %2627 = shalt.err (!%p2624_p13)
}
  0x5d   : > { %s2628_s27 = scalar_lea.vmem %s358_s30, 1024  ;;  %p2636_p6 = scmp.lt.s32.totalorder %s358_s30, %s358_s30 }
  0x5e   : > { %p2629_p0 = scmp.ne.s32.totalorder %s358_s30, %s2628_s27  ;;  %p2637_p8 = scmp.lt.s32.totalorder %s2628_s27, %s2628_s27 }
  0x60   : > { %p2631_p1 = pnand %p2629_p0, %p2792_p7  ;;  %p2638_p9 = por %p2637_p8, %p2636_p6 }
  0x62   : > { %p2632_p4 = pneg %p2631_p1 }
  0x64   : > { %p2639_p10 = pnand %p2638_p9, %p2632_p4 }
  0x66   : > { %2642 = shalt.err (!%p2639_p10)
}
  0x67   : > { %2385 = dma.hbm_to_vmem [thread:$0]  (!%p2778_p5), %s3506_s8, 1024, %s358_s30, [#allocation9], %s2687_s23, %s2687_s23, %s2688_s20  }
  0x68   : > { %s2643_s29 = scalar_lea.vmem %s375_s12, 16  ;;  %p2651_p12 = scmp.lt.s32.totalorder %s375_s12, %s375_s12 }
  0x69   : > { %p2644_p2 = scmp.ne.s32.totalorder %s375_s12, %s2643_s29  ;;  %p2652_p13 = scmp.lt.s32.totalorder %s2643_s29, %s2643_s29 }
  0x6b   : > { %p2646_p3 = pnand %p2644_p2, %p2792_p7  ;;  %p2653_p0 = por %p2652_p13, %p2651_p12 }
  0x6d   : > { %p2647_p11 = pneg %p2646_p3 }
  0x6f   : > { %p2654_p1 = pnand %p2653_p0, %p2647_p11 }
  0x71   : > { %2657 = shalt.err (!%p2654_p1)
}
  0x72   : > { %s2690_s13 = smov [#allocation10]   ;;  %p3520_p4 = scmp.ne.s32.totalorder %s3516_s22, 0 }
  0x73   : > { %2388 = dma.vmem_to_smem (!%p2778_p5), %s375_s12, 16, %s2690_s13, [#allocation4]  }
  0x74   : > { %405 = sbr.rel (%p3520_p4) target bundleno = 1389 (0x56d), region = 64  ;;  %p3521_p6 = scmp.ne.s32.totalorder (!%p3520_p4), %s3515_s21, 0 }
  0x7b   : > { %2663 = dma.done.wait (%p3521_p6), [#allocation3], 1024  }
  0x7c   : > { %2665 = vsyncadd (%p3521_p6), [#allocation3], 4294966272 }
  0x7d   : > { %2667 = dma.done.wait (%p3521_p6), [#allocation6], 3072  }
  0x7e   : > { %2669 = vsyncadd (%p3521_p6), [#allocation6], 4294964224 }
  0x7f   : > { %2671 = dma.done.wait (%p3521_p6), [#allocation9], 1024  }
  0x80   : > { %2673 = vsyncadd (%p3521_p6), [#allocation9], 4294966272 }
  0x81   : > { %2675 = dma.done.wait (%p3521_p6), [#allocation4], 16  }
  0x82   : > { %2677 = vsyncadd (%p3521_p6), [#allocation4], 4294967280 }
  0x83   : > { %427 = sfence }
  0x84   : > { %v2417_v0 = vld [vmem:[#allocation2] sm:$0xff]   ;;  %s3522_s22 = sadd.s32 4294967295, %s2680_s17   ;;  %v2418_v1 = vld [vmem:[#allocation2 + $0x8] sm:$0xff]   ;;  %v2419_v2 = vld [vmem:[#allocation2 + $0x10] sm:$0xff]   ;;  %vm994_vm0 = vcmask 1042432   ;;  %vm969_vm1 = vcmask 48128  }
  0x85   : > { %s2109_s25 = sshll.u32 %s3522_s22, 4  ;;  %2225 = vmatprep.subr.bf16.mxu0 %v2417_v0  ;;  %v2420_v3 = vld [vmem:[#allocation2 + $0x18] sm:$0xff]   ;;  %v2421_v7 = vld [vmem:[#allocation2 + $0x20] sm:$0xff]   ;;  %v2422_v8 = vld [vmem:[#allocation2 + $0x28] sm:$0xff]   ;;  %s1816_s19 = sld [smem:[#allocation10]] }
  0x86   : > { %p468_p5 = scmp.lt.s32.totalorder %s2109_s25, 31  ;;  %2226 = vmatpush3.bf16.msra.mxu0 %v2417_v0  ;;  %v2423_v9 = vld [vmem:[#allocation2 + $0x30] sm:$0xff]   ;;  %v2424_v10 = vld [vmem:[#allocation2 + $0x38] sm:$0xff]   ;;  %v2115_v32 = vld [vmem:[%s3501_s3] ss:$0 sm:$0xff] }
  0x87   : > { %2227 = vmatprep.subr.bf16.mxu0 %v2418_v1  ;;  %v2939_v34 = vld [vmem:[%s3501_s3 + $0x3] ss:$0 sm:$0xff] }
  0x88   : > { %s3524_s25 = smov (!%p468_p5, %s2109_s25), 31 }
  0x89   : > { %s2909_s14 = sshll.u32 %s3524_s25, 3 }
  0x8a   : > { %s2915_s21 = scalar_lea.vmem %s3498_s0, %s2909_s14  ;;  %2228 = vmatpush3.bf16.msra.mxu0 %v2418_v1  ;;  %s3009_s24 = scalar_lea.vmem %s3499_s1, %s2909_s14 }
  0x8b   : > { %2229 = vmatprep.subr.bf16.mxu0 %v2419_v2  ;;  %v486_v4 = vld [vmem:[%s2915_s21] sm:$0xff]  ;;  %v487_v5 = vld [vmem:[%s2915_s21 + $0x8] sm:$0xff]  ;;  %v488_v11 = vld [vmem:[%s2915_s21 + $0x10] sm:$0xff]  ;;  %s3379_s26 = scalar_lea.vmem %s3509_s11, %s2909_s14 }
  0x8c   : > { %v518_v6 = vpack.c.bf16 %v487_v5, %v486_v4  ;;  %v489_v12 = vld [vmem:[%s2915_s21 + $0x18] sm:$0xff]  ;;  %v490_v13 = vld [vmem:[%s2915_s21 + $0x20] sm:$0xff]  ;;  %v491_v14 = vld [vmem:[%s2915_s21 + $0x28] sm:$0xff] }
  0x8d   : > { %v519_v15 = vpack.c.bf16 %v489_v12, %v488_v11  ;;  %v520_v16 = vpack.c.bf16 %v491_v14, %v490_v13  ;;  %v492_v17 = vld [vmem:[%s2915_s21 + $0x30] sm:$0xff]  ;;  %v493_v18 = vld [vmem:[%s2915_s21 + $0x38] sm:$0xff]  ;;  %v494_v19 = vld [vmem:[%s2915_s21 + $0x40] sm:$0xff] }
  0x8e   : > { %2230 = vmatpush3.bf16.msra.mxu0 %v2419_v2  ;;  %2241 = vmatprep.mubr.bf16.mxu0 %v518_v6  ;;  %v495_v20 = vld [vmem:[%s2915_s21 + $0x48] sm:$0xff]  ;;  %v521_v21 = vpack.c.bf16 %v493_v18, %v492_v17  ;;  %v496_v23 = vld [vmem:[%s2915_s21 + $0x50] sm:$0xff]  ;;  %v497_v24 = vld [vmem:[%s2915_s21 + $0x58] sm:$0xff] }
  0x8f   : > { %2231 = vmatprep.subr.bf16.mxu0 %v2420_v3  ;;  %v522_v22 = vpack.c.bf16 %v495_v20, %v494_v19  ;;  %v498_v25 = vld [vmem:[%s2915_s21 + $0x60] sm:$0xff]  ;;  %v499_v26 = vld [vmem:[%s2915_s21 + $0x68] sm:$0xff]  ;;  %v523_v27 = vpack.c.bf16 %v497_v24, %v496_v23  ;;  %v500_v29 = vld [vmem:[%s2915_s21 + $0x70] sm:$0xff] }
  0x90   : > { %v524_v28 = vpack.c.bf16 %v499_v26, %v498_v25  ;;  %v501_v30 = vld [vmem:[%s2915_s21 + $0x78] sm:$0xff]  ;;  %v963_v18 = vld [vmem:[%s3503_s5] sm:$0x77]  ;;  %v503_v24 = vld [vmem:[%s3009_s24 + $0x8] sm:$0xff] }
  0x91   : > { %v525_v31 = vpack.c.bf16 %v501_v30, %v500_v29  ;;  %v2128_v19 = vcombine.high %v963_v18, %v963_v18  ;;  %v2127_v20 = vcombine.low %v963_v18, %v963_v18  ;;  %v502_v23 = vld [vmem:[%s3009_s24] sm:$0xff]  ;;  %v2430_v29 = vld [vmem:[#allocation5 + $0x10] ss:$8 sps:$4 sm:$0xff]  }
  0x92   : > { %2232 = vmatpush3.bf16.msra.mxu0 %v2420_v3  ;;  %v955_v26 = vpack.c.bf16 %v503_v24, %v502_v23  ;;  %v504_v30 = vld [vmem:[%s3009_s24 + $0x10] sm:$0xff] }
  0x93   : > { %2233 = vmatprep.subr.bf16.mxu0 %v2421_v7  ;;  %2129 = vmatprep.subr.msk.bf16.mxu1 %vm994_vm0, %v2128_v19  ;;  %v996_v25 = vsel %vm994_vm0, %v2127_v20, 0 }
  0x94   : > { %1002 = vmatpush1.bf16.msra.mxu1 %v996_v25 }
  0x96   : > { %2234 = vmatpush3.bf16.msra.mxu0 %v2421_v7 }
  0x97   : > { %2235 = vmatprep.subr.bf16.mxu0 %v2422_v8 }
  0x9a   : > { %2236 = vmatpush3.bf16.msra.mxu0 %v2422_v8 }
  0x9b   : > { %2237 = vmatprep.subr.bf16.mxu0 %v2423_v9 }
  0x9e   : > { %2238 = vmatpush3.bf16.msra.mxu0 %v2423_v9 }
  0x9f   : > { %2239 = vmatprep.subr.bf16.mxu0 %v2424_v10 }
  0xa2   : > { %2240 = vmatpush3.bf16.msra.mxu0 %v2424_v10 }
  0xa5   : > { %2242 = vmatmul.mubr.bf16.vlgmr.msra.gmra.mrb[0].mxu0 %v519_v15 }
  0xa6   : > { %2245 = vmatprep.mubr.bf16.mxu0 %v520_v16 }
  0xad   : > { %2246 = vmatmul.mubr.bf16.gmra.mrb[4].mxu0 %v521_v21  ;;  %v2691_v21 = vmov 0  }
  0xae   : > { %2249 = vmatprep.mubr.bf16.mxu0 %v522_v22  ;;  %1033 = vmatprep.mubr.bf16.mxu1 %v2691_v21  ;;  %v2429_v22 = vld [vmem:[#allocation5 + $0x4] ss:$8 sps:$4 sm:$0xff]  }
  0xaf   : > { %1194 = vmatprep.subr.bf16.mxu1 %v2429_v22  ;;  %2130 = vmatmul.mubr.msk.bf16.vlgmr.msra.gmra.mrb[0].mxu1 %vm969_vm1, %v955_v26 }
  0xb0   : > { %1043 = vmatprep.mubr.bf16.mxu1 %v2691_v21 }
  0xb5   : > { %2250 = vmatmul.mubr.bf16.gmra.mrb[8].mxu0 %v523_v27  ;;  %v2427_v27 = vld [vmem:[#allocation5] ss:$8 sps:$4 sm:$0xff]  }
  0xb6   : > { %2253 = vmatprep.mubr.bf16.mxu0 %v524_v28  ;;  %v2432_v28 = vld [vmem:[#allocation5 + $0x14] ss:$8 sps:$4 sm:$0xff]   ;;  %1195 = vmatpush1.bf16.msra.mxu1 %v2427_v27 }
  0xb7   : > { %1196 = vmatprep.subr.bf16.mxu1 %v2432_v28 }
  0xba   : > { %1197 = vmatpush1.bf16.msra.mxu1 %v2430_v29 }
  0xbd   : > { %2254 = vmatmul.mubr.bf16.gmra.mrb[12].mxu0 %v525_v31  ;;  %v505_v31 = vld [vmem:[%s3009_s24 + $0x18] sm:$0xff] }
 0x178   : > { %v2243_v33 = vpop.f32.mrb[0].mxu0 }
 0x179   : > { %v2941_v35 = vadd.f32 %v2243_v33, %v2115_v32  ;;  %v632_v36 = vpop.f32.mrb[1].mxu0  ;;  %v956_v33 = vpack.c.bf16 %v505_v31, %v504_v30  ;;  %v510_v31 = vld [vmem:[%s3009_s24 + $0x40] sm:$0xff] }
 0x17a   : > { %v2943_v37 = vadd.f32 %v2115_v32, %v632_v36  ;;  %v2244_v38 = vpop.f32.mrb[2].mxu0  ;;  %v2433_v36 = vld [vmem:[#allocation5 + $0x20] ss:$8 sps:$4 sm:$0xff]  }
 0x17b   : > { %v2945_v39 = vadd.f32 %v2244_v38, %v2115_v32  ;;  %v635_v40 = vpop.f32.mrb[3].mxu0  ;;  %v701_v41 = vmul.f32 %v2939_v34, %v2941_v35  ;;  %v2438_v38 = vld [vmem:[#allocation5 + $0x34] ss:$8 sps:$4 sm:$0xff]   ;;  %2131 = vmatmul.mubr.msk.bf16.gmra.mrb[4].mxu1 %vm969_vm1, %v956_v33 }
 0x17c   : > { %v2949_v42 = vadd.f32 %v2115_v32, %v635_v40  ;;  %v699_v43 = vmul.f32 %v2939_v34, %v2943_v37  ;;  %1053 = vmatprep.mubr.bf16.mxu1 %v2691_v21  ;;  %v506_v40 = vld [vmem:[%s3009_s24 + $0x20] sm:$0xff] }
 0x17d   : > { %719 = vadd.xlane.f32.xlu1 %v701_v41  ;;  %v702_v44 = vmul.f32 %v2939_v34, %v2945_v39  ;;  %v507_v41 = vld [vmem:[%s3009_s24 + $0x28] sm:$0xff] }
 0x17e   : > { %715 = vadd.xlane.f32.xlu0 %v699_v43  ;;  %v700_v46 = vmul.f32 %v2939_v34, %v2949_v42  ;;  %v2436_v43 = vld [vmem:[#allocation5 + $0x30] ss:$8 sps:$4 sm:$0xff]  }
 0x180   : > { %v2247_v45 = vpop.f32.mrb[4].mxu0 }
 0x181   : > { %721 = vadd.xlane.f32.xlu1 %v702_v44  ;;  %v648_v47 = vpop.f32.mrb[5].mxu0  ;;  %v2957_v48 = vadd.f32 %v2247_v45, %v2115_v32  ;;  %v957_v44 = vpack.c.bf16 %v507_v41, %v506_v40  ;;  %v508_v45 = vld [vmem:[%s3009_s24 + $0x30] sm:$0xff] }
 0x182   : > { %v2959_v49 = vadd.f32 %v2115_v32, %v648_v47  ;;  %v2248_v50 = vpop.f32.mrb[6].mxu0  ;;  %717 = vadd.xlane.f32.xlu0 %v700_v46  ;;  %v509_v46 = vld [vmem:[%s3009_s24 + $0x38] sm:$0xff] }
 0x183   : > { %v651_v51 = vpop.f32.mrb[7].mxu0  ;;  %v2961_v52 = vadd.f32 %v2248_v50, %v2115_v32  ;;  %v705_v56 = vmul.f32 %v2939_v34, %v2957_v48  ;;  %2132 = vmatmul.mubr.msk.bf16.gmra.mrb[8].mxu1 %vm969_vm1, %v957_v44  ;;  %v958_v47 = vpack.c.bf16 %v509_v46, %v508_v45 }
 0x184   : > { %v2963_v53 = vadd.f32 %v2115_v32, %v651_v51  ;;  %v703_v54 = vmul.f32 %v2939_v34, %v2959_v49  ;;  %1063 = vmatprep.mubr.bf16.mxu1 %v2691_v21 }
 0x185   : > { %v706_v58 = vmul.f32 %v2939_v34, %v2961_v52 }
 0x186   : > { %723 = vadd.xlane.f32.xlu0 %v703_v54  ;;  %v704_v55 = vmul.f32 %v2939_v34, %v2963_v53 }
 0x188   : > { %v2251_v57 = vpop.f32.mrb[8].mxu0  ;;  %725 = vadd.xlane.f32.xlu1 %v704_v55 }
 0x189   : > { %v664_v59 = vpop.f32.mrb[9].mxu0  ;;  %v2973_v60 = vadd.f32 %v2251_v57, %v2115_v32 }
 0x18a   : > { %v2975_v61 = vadd.f32 %v2115_v32, %v664_v59  ;;  %v2252_v62 = vpop.f32.mrb[10].mxu0  ;;  %727 = vadd.xlane.f32.xlu0 %v705_v56 }
 0x18b   : > { %v667_v63 = vpop.f32.mrb[11].mxu0  ;;  %v2977_v0 = vadd.f32 %v2252_v62, %v2115_v32  ;;  %v709_v4 = vmul.f32 %v2939_v34, %v2973_v60  ;;  %2133 = vmatmul.mubr.msk.bf16.gmra.mrb[12].mxu1 %vm969_vm1, %v958_v47 }
 0x18c   : > { %v2979_v1 = vadd.f32 %v2115_v32, %v667_v63  ;;  %729 = vadd.xlane.f32.xlu1 %v706_v58  ;;  %v707_v2 = vmul.f32 %v2939_v34, %v2975_v61  ;;  %1073 = vmatprep.mubr.bf16.mxu1 %v2691_v21 }
 0x18d   : > { %v710_v6 = vmul.f32 %v2939_v34, %v2977_v0 }
 0x18e   : > { %731 = vadd.xlane.f32.xlu0 %v707_v2  ;;  %v708_v3 = vmul.f32 %v2939_v34, %v2979_v1 }
 0x190   : > { %v2255_v5 = vpop.f32.mrb[12].mxu0  ;;  %733 = vadd.xlane.f32.xlu1 %v708_v3 }
 0x191   : > { %v680_v7 = vpop.f32.mrb[13].mxu0  ;;  %v2989_v8 = vadd.f32 %v2255_v5, %v2115_v32 }
 0x192   : > { %v2991_v9 = vadd.f32 %v2115_v32, %v680_v7  ;;  %v2256_v10 = vpop.f32.mrb[14].mxu0  ;;  %735 = vadd.xlane.f32.xlu0 %v709_v4 }
 0x193   : > { %v683_v11 = vpop.f32.mrb[15].mxu0  ;;  %v2993_v12 = vadd.f32 %v2256_v10, %v2115_v32  ;;  %v713_v16 = vmul.f32 %v2939_v34, %v2989_v8 }
 0x194   : > { %v2995_v13 = vadd.f32 %v2115_v32, %v683_v11  ;;  %737 = vadd.xlane.f32.xlu1 %v710_v6  ;;  %v711_v14 = vmul.f32 %v2939_v34, %v2991_v9  ;;  %v2435_v32 = vld [vmem:[#allocation5 + $0x24] ss:$8 sps:$4 sm:$0xff]  }
 0x195   : > { %v714_v17 = vmul.f32 %v2939_v34, %v2993_v12  ;;  %1198 = vmatprep.subr.bf16.mxu1 %v2435_v32  ;;  %v511_v32 = vld [vmem:[%s3009_s24 + $0x48] sm:$0xff] }
 0x196   : > { %739 = vadd.xlane.f32.xlu0 %v711_v14  ;;  %v712_v15 = vmul.f32 %v2939_v34, %v2995_v13  ;;  %1199 = vmatpush1.bf16.msra.mxu1 %v2433_v36  ;;  %v959_v36 = vpack.c.bf16 %v511_v32, %v510_v31 }
 0x197   : > { %1200 = vmatprep.subr.bf16.mxu1 %v2438_v38 }
 0x198   : > { %741 = vadd.xlane.f32.xlu1 %v712_v15  ;;  %2134 = vmatmul.mubr.msk.bf16.gmra.mrb[16].mxu1 %vm969_vm1, %v959_v36 }
 0x199   : > { %1083 = vmatprep.mubr.bf16.mxu1 %v2691_v21 }
 0x19a   : > { %743 = vadd.xlane.f32.xlu0 %v713_v16  ;;  %1201 = vmatpush1.bf16.msra.mxu1 %v2436_v43 }
 0x19c   : > { %745 = vadd.xlane.f32.xlu1 %v714_v17 }
 0x20a   : > { %v720_v50 = vpop.xlane.xlu1 %719 }
 0x20b   : > { %v716_v51 = vpop.xlane.xlu0 %715  ;;  %v3032_v54 = vsub.f32 %v2941_v35, %v720_v50 }
 0x20c   : > { %v3035_v55 = vsub.f32 %v2943_v37, %v716_v51 }
 0x20d   : > { %v765_v59 = vmul.f32 %v3032_v54, %v3032_v54 }
 0x20e   : > { %v763_v56 = vmul.f32 %v3035_v55, %v3035_v55  ;;  %v722_v57 = vpop.xlane.xlu1 %721 }
 0x20f   : > { %v718_v58 = vpop.xlane.xlu0 %717  ;;  %v3042_v62 = vsub.f32 %v2945_v39, %v722_v57  ;;  %v781_v5 = vmul.f32 %v2939_v34, %v765_v59  ;;  %v512_v57 = vld [vmem:[%s3009_s24 + $0x50] sm:$0xff] }
 0x210   : > { %v3045_v63 = vsub.f32 %v2949_v42, %v718_v58  ;;  %v779_v35 = vmul.f32 %v2939_v34, %v763_v56  ;;  %v513_v58 = vld [vmem:[%s3009_s24 + $0x58] sm:$0xff] }
 0x211   : > { %v766_v3 = vmul.f32 %v3042_v62, %v3042_v62  ;;  %v960_v59 = vpack.c.bf16 %v513_v58, %v512_v57 }
 0x212   : > { %v764_v37 = vmul.f32 %v3045_v63, %v3045_v63  ;;  %795 = vadd.xlane.f32.xlu0 %v779_v35 }
 0x213   : > { %v724_v2 = vpop.xlane.xlu0 %723  ;;  %v782_v14 = vmul.f32 %v2939_v34, %v766_v3  ;;  %2135 = vmatmul.mubr.msk.bf16.gmra.mrb[20].mxu1 %vm969_vm1, %v960_v59  ;;  %v2439_v3 = vld [vmem:[#allocation5 + $0x40] ss:$8 sps:$4 sm:$0xff]  }
 0x214   : > { %v3053_v4 = vsub.f32 %v2959_v49, %v724_v2  ;;  %v780_v39 = vmul.f32 %v2939_v34, %v764_v37  ;;  %1093 = vmatprep.mubr.bf16.mxu1 %v2691_v21  ;;  %v2441_v2 = vld [vmem:[#allocation5 + $0x44] ss:$8 sps:$4 sm:$0xff]  }
 0x215   : > { %v726_v6 = vpop.xlane.xlu1 %725  ;;  %1202 = vmatprep.subr.bf16.mxu1 %v2441_v2 }
 0x216   : > { %v767_v42 = vmul.f32 %v3053_v4, %v3053_v4  ;;  %v3060_v7 = vsub.f32 %v2963_v53, %v726_v6  ;;  %799 = vadd.xlane.f32.xlu0 %v781_v5  ;;  %797 = vadd.xlane.f32.xlu1 %v780_v39  ;;  %v514_v5 = vld [vmem:[%s3009_s24 + $0x60] sm:$0xff]  ;;  %v515_v39 = vld [vmem:[%s3009_s24 + $0x68] sm:$0xff] }
 0x217   : > { %v728_v10 = vpop.xlane.xlu0 %727  ;;  %v961_v6 = vpack.c.bf16 %v515_v39, %v514_v5  ;;  %1203 = vmatpush1.bf16.msra.mxu1 %v2439_v3 }
 0x218   : > { %v768_v11 = vmul.f32 %v3060_v7, %v3060_v7  ;;  %v3065_v49 = vsub.f32 %v2957_v48, %v728_v10  ;;  %v783_v15 = vmul.f32 %v2939_v34, %v767_v42  ;;  %v2444_v42 = vld [vmem:[#allocation5 + $0x54] ss:$8 sps:$4 sm:$0xff]   ;;  %v2442_v10 = vld [vmem:[#allocation5 + $0x50] ss:$8 sps:$4 sm:$0xff]  }
 0x219   : > { %v730_v16 = vpop.xlane.xlu1 %729  ;;  %1204 = vmatprep.subr.bf16.mxu1 %v2444_v42 }
 0x21a   : > { %v769_v17 = vmul.f32 %v3065_v49, %v3065_v49  ;;  %v3072_v53 = vsub.f32 %v2961_v52, %v730_v16  ;;  %801 = vadd.xlane.f32.xlu1 %v782_v14  ;;  %803 = vadd.xlane.f32.xlu0 %v783_v15  ;;  %v784_v20 = vmul.f32 %v2939_v34, %v768_v11  ;;  %v516_v11 = vld [vmem:[%s3009_s24 + $0x70] sm:$0xff]  ;;  %v517_v14 = vld [vmem:[%s3009_s24 + $0x78] sm:$0xff]  ;;  %v2445_v16 = vld [vmem:[#allocation5 + $0x60] ss:$8 sps:$4 sm:$0xff]   ;;  %s2174_s24 = sld [smem:[#allocation10 + $0x1]] }
 0x21b   : > { %v732_v18 = vpop.xlane.xlu0 %731  ;;  %2136 = vmatmul.mubr.msk.bf16.gmra.mrb[24].mxu1 %vm969_vm1, %v961_v6  ;;  %v962_v15 = vpack.c.bf16 %v517_v14, %v516_v11 }
 0x21c   : > { %v770_v19 = vmul.f32 %v3072_v53, %v3072_v53  ;;  %v3077_v48 = vsub.f32 %v2975_v61, %v732_v18  ;;  %v785_v22 = vmul.f32 %v2939_v34, %v769_v17  ;;  %1103 = vmatprep.mubr.bf16.mxu1 %v2691_v21  ;;  %1205 = vmatpush1.bf16.msra.mxu1 %v2442_v10  ;;  %v2450_v17 = vld [vmem:[#allocation5 + $0x74] ss:$8 sps:$4 sm:$0xff]   ;;  %v2448_v18 = vld [vmem:[#allocation5 + $0x70] ss:$8 sps:$4 sm:$0xff]  }
 0x21d   : > { %v734_v23 = vpop.xlane.xlu1 %733 }
 0x21e   : > { %v771_v52 = vmul.f32 %v3077_v48, %v3077_v48  ;;  %v3084_v24 = vsub.f32 %v2979_v1, %v734_v23  ;;  %805 = vadd.xlane.f32.xlu1 %v784_v20  ;;  %807 = vadd.xlane.f32.xlu0 %v785_v22  ;;  %v786_v27 = vmul.f32 %v2939_v34, %v770_v19  ;;  %v2451_v19 = vld [vmem:[#allocation7] sm:$0xff]   ;;  %v2452_v20 = vld [vmem:[#allocation7 + $0x8] sm:$0xff]   ;;  %v2453_v22 = vld [vmem:[#allocation7 + $0x10] sm:$0xff]  }
 0x21f   : > { %v736_v25 = vpop.xlane.xlu0 %735  ;;  %2257 = vmatprep.subr.bf16.mxu0 %v2451_v19  ;;  %v2454_v23 = vld [vmem:[#allocation7 + $0x18] sm:$0xff]  }
 0x220   : > { %v772_v61 = vmul.f32 %v3084_v24, %v3084_v24  ;;  %v3089_v26 = vsub.f32 %v2973_v60, %v736_v25  ;;  %v787_v28 = vmul.f32 %v2939_v34, %v771_v52  ;;  %2258 = vmatpush3.bf16.msra.mxu0 %v2451_v19 }
 0x221   : > { %v738_v29 = vpop.xlane.xlu1 %737  ;;  %2259 = vmatprep.subr.bf16.mxu0 %v2452_v20 }
 0x222   : > { %v773_v30 = vmul.f32 %v3089_v26, %v3089_v26  ;;  %v3096_v1 = vsub.f32 %v2977_v0, %v738_v29  ;;  %809 = vadd.xlane.f32.xlu1 %v786_v27  ;;  %811 = vadd.xlane.f32.xlu0 %v787_v28  ;;  %v788_v40 = vmul.f32 %v2939_v34, %v772_v61 }
 0x223   : > { %v740_v33 = vpop.xlane.xlu0 %739  ;;  %2137 = vmatmul.mubr.msk.bf16.gmra.mrb[28].mxu1 %vm969_vm1, %v962_v15 }
 0x224   : > { %v774_v60 = vmul.f32 %v3096_v1, %v3096_v1  ;;  %v3103_v38 = vsub.f32 %v2991_v9, %v740_v33  ;;  %v789_v41 = vmul.f32 %v2939_v34, %v773_v30  ;;  %1226 = vmatprep.mubr.bf16.mxu1 %v2691_v21  ;;  %2260 = vmatpush3.bf16.msra.mxu0 %v2452_v20 }
 0x225   : > { %v742_v43 = vpop.xlane.xlu1 %741  ;;  %2261 = vmatprep.subr.bf16.mxu0 %v2453_v22 }
 0x226   : > { %v775_v0 = vmul.f32 %v3103_v38, %v3103_v38  ;;  %v3111_v44 = vsub.f32 %v2995_v13, %v742_v43  ;;  %813 = vadd.xlane.f32.xlu1 %v788_v40  ;;  %815 = vadd.xlane.f32.xlu0 %v789_v41  ;;  %v790_v47 = vmul.f32 %v2939_v34, %v774_v60  ;;  %v3146_v40 = vld [vmem:[%s3501_s3 + $0x1] ss:$0 sm:$0xff] }
 0x227   : > { %v744_v45 = vpop.xlane.xlu0 %743 }
 0x228   : > { %v776_v9 = vmul.f32 %v3111_v44, %v3111_v44  ;;  %v3117_v46 = vsub.f32 %v2989_v8, %v744_v45  ;;  %v791_v50 = vmul.f32 %v2939_v34, %v775_v0  ;;  %2262 = vmatpush3.bf16.msra.mxu0 %v2453_v22  ;;  %v3152_v45 = vld [vmem:[%s3501_s3 + $0x2] ss:$0 sm:$0xff] }
 0x229   : > { %v746_v51 = vpop.xlane.xlu1 %745  ;;  %2263 = vmatprep.subr.bf16.mxu0 %v2454_v23 }
 0x22a   : > { %v777_v13 = vmul.f32 %v3117_v46, %v3117_v46  ;;  %v3124_v56 = vsub.f32 %v2993_v12, %v746_v51  ;;  %817 = vadd.xlane.f32.xlu1 %v790_v47  ;;  %819 = vadd.xlane.f32.xlu0 %v791_v50  ;;  %v792_v35 = vmul.f32 %v2939_v34, %v776_v9 }
 0x22c   : > { %v778_v8 = vmul.f32 %v3124_v56, %v3124_v56  ;;  %v793_v37 = vmul.f32 %v2939_v34, %v777_v13  ;;  %2264 = vmatpush3.bf16.msra.mxu0 %v2454_v23 }
 0x22e   : > { %821 = vadd.xlane.f32.xlu1 %v792_v35  ;;  %823 = vadd.xlane.f32.xlu0 %v793_v37  ;;  %v794_v12 = vmul.f32 %v2939_v34, %v778_v8  ;;  %v2447_v34 = vld [vmem:[#allocation5 + $0x64] ss:$8 sps:$4 sm:$0xff]  }
 0x22f   : > { %1206 = vmatprep.subr.bf16.mxu1 %v2447_v34 }
 0x230   : > { %1207 = vmatpush1.bf16.msra.mxu1 %v2445_v16 }
 0x231   : > { %1208 = vmatprep.subr.bf16.mxu1 %v2450_v17 }
 0x232   : > { %825 = vadd.xlane.f32.xlu1 %v794_v12 }
 0x234   : > { %1209 = vmatpush1.bf16.msra.mxu1 %v2448_v18 }
 0x29f   : > { %v796_v52 = vpop.xlane.xlu0 %795 }
 0x2a0   : > { %v827_v25 = vadd.f32 1e-05, %v796_v52 }
 0x2a2   : > { %2467 = vrsqrt.f32 %v827_v25 }
 0x2a3   : > { %v798_v61 = vpop.xlane.xlu1 %797  ;;  %v800_v27 = vpop.xlane.xlu0 %799 }
 0x2a4   : > { %v828_v28 = vadd.f32 1e-05, %v798_v61  ;;  %v829_v29 = vadd.f32 1e-05, %v800_v27 }
 0x2a6   : > { %2469 = vrsqrt.f32 %v828_v28 }
 0x2a7   : > { %2471 = vrsqrt.f32 %v829_v29  ;;  %v802_v30 = vpop.xlane.xlu1 %801  ;;  %v804_v31 = vpop.xlane.xlu0 %803 }
 0x2a8   : > { %v830_v32 = vadd.f32 1e-05, %v802_v30  ;;  %v831_v33 = vadd.f32 1e-05, %v804_v31 }
 0x2aa   : > { %2473 = vrsqrt.f32 %v830_v32 }
 0x2ab   : > { %v806_v36 = vpop.xlane.xlu1 %805  ;;  %2475 = vrsqrt.f32 %v831_v33  ;;  %v808_v0 = vpop.xlane.xlu0 %807 }
 0x2ac   : > { %v2468_v60 = vpop.eup %2467  ;;  %v832_v41 = vadd.f32 1e-05, %v806_v36  ;;  %v833_v58 = vadd.f32 1e-05, %v808_v0 }
 0x2ad   : > { %v859_v43 = vmul.f32 %v2468_v60, %v3035_v55 }
 0x2ae   : > { %2477 = vrsqrt.f32 %v832_v41 }
 0x2af   : > { %v879_v9 = vmul.f32 %v3146_v40, %v859_v43  ;;  %v810_v47 = vpop.xlane.xlu1 %809  ;;  %v812_v39 = vpop.xlane.xlu0 %811 }
 0x2b0   : > { %v2470_v50 = vpop.eup %2469  ;;  %v834_v51 = vadd.f32 1e-05, %v810_v47  ;;  %v835_v11 = vadd.f32 1e-05, %v812_v39 }
 0x2b1   : > { %v2472_v13 = vpop.eup %2471  ;;  %v860_v57 = vmul.f32 %v2470_v50, %v3045_v63  ;;  %v899_v59 = vadd.f32 %v3152_v45, %v879_v9 }
 0x2b2   : > { %v861_v8 = vmul.f32 %v2472_v13, %v3032_v54  ;;  %2479 = vrsqrt.f32 %v834_v51 }
 0x2b3   : > { %v880_v55 = vmul.f32 %v3146_v40, %v860_v57  ;;  %2481 = vrsqrt.f32 %v833_v58  ;;  %v814_v2 = vpop.xlane.xlu1 %813  ;;  %v816_v19 = vpop.xlane.xlu0 %815 }
 0x2b4   : > { %v2474_v35 = vpop.eup %2473  ;;  %2483 = vtanh.f32 %v899_v59  ;;  %v881_v63 = vmul.f32 %v3146_v40, %v861_v8  ;;  %v836_v42 = vadd.f32 1e-05, %v814_v2  ;;  %v837_v52 = vadd.f32 1e-05, %v816_v19 }
 0x2b5   : > { %v900_v37 = vadd.f32 %v3152_v45, %v880_v55  ;;  %v862_v12 = vmul.f32 %v2474_v35, %v3042_v62  ;;  %v2476_v3 = vpop.eup %2475 }
 0x2b6   : > { %v863_v14 = vmul.f32 %v2476_v3, %v3053_v4  ;;  %v901_v62 = vadd.f32 %v3152_v45, %v881_v63 }
 0x2b7   : > { %2485 = vtanh.f32 %v900_v37  ;;  %v882_v5 = vmul.f32 %v3146_v40, %v862_v12  ;;  %v818_v15 = vpop.xlane.xlu1 %817  ;;  %v820_v32 = vpop.xlane.xlu0 %819 }
 0x2b8   : > { %v2478_v6 = vpop.eup %2477  ;;  %2487 = vrsqrt.f32 %v836_v42  ;;  %v883_v18 = vmul.f32 %v3146_v40, %v863_v14  ;;  %v838_v20 = vadd.f32 1e-05, %v818_v15  ;;  %v839_v43 = vadd.f32 1e-05, %v820_v32  ;;  %v2458_v32 = vld [vmem:[#allocation7 + $0x38] sm:$0xff]  }
 0x2b9   : > { %v864_v54 = vmul.f32 %v2478_v6, %v3060_v7  ;;  %v902_v10 = vadd.f32 %v3152_v45, %v882_v5 }
 0x2ba   : > { %v903_v27 = vadd.f32 %v3152_v45, %v883_v18 }
 0x2bb   : > { %v884_v34 = vmul.f32 %v3146_v40, %v864_v54  ;;  %2489 = vtanh.f32 %v902_v10  ;;  %v822_v29 = vpop.xlane.xlu1 %821  ;;  %v824_v58 = vpop.xlane.xlu0 %823 }
 0x2bc   : > { %v2480_v16 = vpop.eup %2479  ;;  %2491 = vrsqrt.f32 %v835_v11  ;;  %v840_v36 = vadd.f32 1e-05, %v822_v29  ;;  %v841_v37 = vadd.f32 1e-05, %v824_v58 }
 0x2bd   : > { %v2482_v17 = vpop.eup %2481  ;;  %2493 = vtanh.f32 %v901_v62  ;;  %v866_v23 = vmul.f32 %v2480_v16, %v3072_v53  ;;  %v904_v4 = vadd.f32 %v3152_v45, %v884_v34 }
 0x2be   : > { %v2484_v7 = vpop.eup %2483  ;;  %v865_v61 = vmul.f32 %v2482_v17, %v3065_v49  ;;  %2495 = vrsqrt.f32 %v838_v20 }
 0x2bf   : > { %v886_v28 = vmul.f32 %v3146_v40, %v866_v23  ;;  %2497 = vtanh.f32 %v904_v4  ;;  %v826_v51 = vpop.xlane.xlu1 %825 }
 0x2c0   : > { %2499 = vrsqrt.f32 %v837_v52  ;;  %v885_v53 = vmul.f32 %v3146_v40, %v865_v61  ;;  %v842_v55 = vadd.f32 1e-05, %v826_v51 }
 0x2c1   : > { %v2486_v22 = vpop.eup %2485  ;;  %2501 = vtanh.f32 %v903_v27  ;;  %v906_v41 = vadd.f32 %v3152_v45, %v886_v28 }
 0x2c2   : > { %v931_v25 = vpack.c.bf16 %v2486_v22, %v2484_v7  ;;  %v2488_v30 = vpop.eup %2487  ;;  %v905_v47 = vadd.f32 %v3152_v45, %v885_v53  ;;  %2503 = vrsqrt.f32 %v840_v36  ;;  %v2456_v53 = vld [vmem:[#allocation7 + $0x28] sm:$0xff]   ;;  %v1309_v36 = vlaneseq }
 0x2c3   : > { %v868_v60 = vmul.f32 %v2488_v30, %v3084_v24  ;;  %2505 = vtanh.f32 %v906_v41 }
 0x2c4   : > { %1227 = vmatmul.mubr.bf16.vlgmr.msra.gmra.mrb[0].mxu1 %v931_v25  ;;  %2507 = vrsqrt.f32 %v839_v43 }
 0x2c5   : > { %1236 = vmatprep.mubr.bf16.mxu1 %v2691_v21  ;;  %v2490_v31 = vpop.eup %2489  ;;  %v888_v50 = vmul.f32 %v3146_v40, %v868_v60  ;;  %2509 = vtanh.f32 %v905_v47  ;;  %v1307_v60 = vld [vmem:[%s3504_s6] sm:$0x3] }
 0x2c6   : > { %v2492_v33 = vpop.eup %2491  ;;  %2511 = vrsqrt.f32 %v842_v55 }
 0x2c7   : > { %v2494_v49 = vpop.eup %2493  ;;  %v867_v9 = vmul.f32 %v2492_v33, %v3077_v48  ;;  %v908_v35 = vadd.f32 %v3152_v45, %v888_v50  ;;  %v2459_v33 = vld [vmem:[#allocation8] sm:$0xff]  }
 0x2c8   : > { %v932_v0 = vpack.c.bf16 %v2490_v31, %v2494_v49  ;;  %v2496_v13 = vpop.eup %2495  ;;  %v2455_v31 = vld [vmem:[#allocation7 + $0x20] sm:$0xff]  }
 0x2c9   : > { %v2498_v57 = vpop.eup %2497  ;;  %v887_v24 = vmul.f32 %v3146_v40, %v867_v9  ;;  %v870_v8 = vmul.f32 %v2496_v13, %v3096_v1  ;;  %2513 = vtanh.f32 %v908_v35  ;;  %2265 = vmatprep.subr.bf16.mxu0 %v2455_v31 }
 0x2ca   : > { %v2500_v59 = vpop.eup %2499  ;;  %2515 = vrsqrt.f32 %v841_v37  ;;  %2266 = vmatpush3.bf16.msra.mxu0 %v2455_v31  ;;  %v2463_v31 = vld [vmem:[#allocation8 + $0x20] sm:$0xff]  }
 0x2cb   : > { %v2502_v48 = vpop.eup %2501  ;;  %v869_v2 = vmul.f32 %v2500_v59, %v3089_v26  ;;  %v907_v3 = vadd.f32 %v3152_v45, %v887_v24  ;;  %v890_v63 = vmul.f32 %v3146_v40, %v870_v8  ;;  %2267 = vmatprep.subr.bf16.mxu0 %v2456_v53 }
 0x2cc   : > { %1237 = vmatmul.mubr.bf16.gmra.mrb[4].mxu1 %v932_v0  ;;  %v933_v12 = vpack.c.bf16 %v2498_v57, %v2502_v48  ;;  %v2504_v5 = vpop.eup %2503 }
 0x2cd   : > { %1246 = vmatprep.mubr.bf16.mxu1 %v2691_v21  ;;  %v2506_v39 = vpop.eup %2505  ;;  %v889_v1 = vmul.f32 %v3146_v40, %v869_v2  ;;  %2517 = vtanh.f32 %v907_v3  ;;  %v872_v54 = vmul.f32 %v2504_v5, %v3111_v44  ;;  %v910_v26 = vadd.f32 %v3152_v45, %v890_v63 }
 0x2ce   : > { %v2508_v6 = vpop.eup %2507  ;;  %2268 = vmatpush3.bf16.msra.mxu0 %v2456_v53 }
 0x2cf   : > { %v2510_v42 = vpop.eup %2509  ;;  %v871_v11 = vmul.f32 %v2508_v6, %v3103_v38  ;;  %v909_v14 = vadd.f32 %v3152_v45, %v889_v1  ;;  %v892_v62 = vmul.f32 %v3146_v40, %v872_v54  ;;  %2519 = vtanh.f32 %v910_v26 }
 0x2d0   : > { %v934_v10 = vpack.c.bf16 %v2506_v39, %v2510_v42  ;;  %v2512_v34 = vpop.eup %2511 }
 0x2d1   : > { %v891_v16 = vmul.f32 %v3146_v40, %v871_v11  ;;  %2521 = vtanh.f32 %v909_v14  ;;  %v874_v18 = vmul.f32 %v2512_v34, %v3124_v56  ;;  %v912_v19 = vadd.f32 %v3152_v45, %v892_v62  ;;  %v2460_v14 = vld [vmem:[#allocation8 + $0x8] sm:$0xff]  }
 0x2d3   : > { %v2514_v15 = vpop.eup %2513  ;;  %v911_v20 = vadd.f32 %v3152_v45, %v891_v16  ;;  %v894_v22 = vmul.f32 %v3146_v40, %v874_v18  ;;  %2523 = vtanh.f32 %v912_v19 }
 0x2d4   : > { %1247 = vmatmul.mubr.bf16.gmra.mrb[8].mxu1 %v933_v12  ;;  %v2516_v17 = vpop.eup %2515 }
 0x2d5   : > { %1256 = vmatprep.mubr.bf16.mxu1 %v2691_v21  ;;  %v873_v7 = vmul.f32 %v2516_v17, %v3117_v46  ;;  %2525 = vtanh.f32 %v911_v20  ;;  %v914_v56 = vadd.f32 %v3152_v45, %v894_v22 }
 0x2d7   : > { %v2518_v44 = vpop.eup %2517  ;;  %v893_v4 = vmul.f32 %v3146_v40, %v873_v7  ;;  %2527 = vtanh.f32 %v914_v56  ;;  %v2462_v56 = vld [vmem:[#allocation8 + $0x18] sm:$0xff]  }
 0x2d8   : > { %v935_v38 = vpack.c.bf16 %v2514_v15, %v2518_v44 }
 0x2d9   : > { %v2520_v23 = vpop.eup %2519  ;;  %v913_v61 = vadd.f32 %v3152_v45, %v893_v4  ;;  %v2457_v45 = vld [vmem:[#allocation7 + $0x30] sm:$0xff]  }
 0x2da   : > { %2269 = vmatprep.subr.bf16.mxu0 %v2457_v45 }
 0x2db   : > { %v2522_v52 = vpop.eup %2521  ;;  %2529 = vtanh.f32 %v913_v61  ;;  %2270 = vmatpush3.bf16.msra.mxu0 %v2457_v45 }
 0x2dc   : > { %1257 = vmatmul.mubr.bf16.gmra.mrb[12].mxu1 %v934_v10  ;;  %v936_v25 = vpack.c.bf16 %v2520_v23, %v2522_v52  ;;  %2271 = vmatprep.subr.bf16.mxu0 %v2458_v32 }
 0x2dd   : > { %1266 = vmatprep.mubr.bf16.mxu1 %v2691_v21  ;;  %v2524_v46 = vpop.eup %2523 }
 0x2df   : > { %v2526_v27 = vpop.eup %2525  ;;  %2272 = vmatpush3.bf16.msra.mxu0 %v2458_v32 }
 0x2e0   : > { %v937_v28 = vpack.c.bf16 %v2524_v46, %v2526_v27  ;;  %2289 = vmatprep.subr.bf16.mxu0 %v2459_v33 }
 0x2e1   : > { %v2528_v29 = vpop.eup %2527 }
 0x2e4   : > { %1267 = vmatmul.mubr.bf16.gmra.mrb[16].mxu1 %v935_v38  ;;  %v2461_v38 = vld [vmem:[#allocation8 + $0x10] sm:$0xff]  }
 0x2e5   : > { %1276 = vmatprep.mubr.bf16.mxu1 %v2691_v21  ;;  %v2530_v40 = vpop.eup %2529 }
 0x2e6   : > { %v938_v30 = vpack.c.bf16 %v2528_v29, %v2530_v40 }
 0x2ec   : > { %1277 = vmatmul.mubr.bf16.gmra.mrb[20].mxu1 %v936_v25 }
 0x2ed   : > { %1286 = vmatprep.mubr.bf16.mxu1 %v2691_v21 }
 0x2f4   : > { %1287 = vmatmul.mubr.bf16.gmra.mrb[24].mxu1 %v937_v28 }
 0x2f5   : > { %1296 = vmatprep.mubr.bf16.mxu1 %v2691_v21  ;;  %v1310_v21 = vshrl.u32 %v1309_v36, 7 }
 0x2f7   : > { %v1311_v49 = vsub.s32 0, %v1310_v21  ;;  %v1315_v41 = vsub.s32 1, %v1310_v21 }
 0x2f9   : > { %v3212_v43 = vrot.slane %v1307_v60, %v1311_v49  ;;  %v3214_v0 = vrot.slane %v1307_v60, %v1315_v41  ;;  %v2464_v60 = vld [vmem:[#allocation8 + $0x28] sm:$0xff]  }
 0x2fc   : > { %1297 = vmatmul.mubr.bf16.gmra.mrb[28].mxu1 %v938_v30 }
 0x397   : > { %v1228_v9 = vpop.f32.mrb[0].mxu1 }
 0x398   : > { %v1319_v47 = vadd.f32 %v3212_v43, %v1228_v9  ;;  %v1230_v50 = vpop.f32.mrb[1].mxu1 }
 0x399   : > { %v1320_v51 = vadd.f32 %v3214_v0, %v1230_v50  ;;  %v1232_v13 = vpop.f32.mrb[2].mxu1 }
 0x39a   : > { %v1321_v57 = vadd.f32 %v3212_v43, %v1232_v13  ;;  %v1234_v24 = vpop.f32.mrb[3].mxu1  ;;  %v1351_v59 = vmax.f32 %v1319_v47, 0.0 }
 0x39b   : > { %v1322_v58 = vadd.f32 %v3214_v0, %v1234_v24  ;;  %v1352_v48 = vmax.f32 %v1320_v51, 0.0 }
 0x39c   : > { %v1353_v55 = vmax.f32 %v1321_v57, 0.0 }
 0x39d   : > { %v1354_v8 = vmax.f32 %v1322_v58, 0.0  ;;  %v2465_v58 = vld [vmem:[#allocation8 + $0x30] sm:$0xff]  }
 0x39e   : > { %v1383_v35 = vpack.c.bf16 %v1353_v55, %v1351_v59 }
 0x39f   : > { %v3220_v37 = vpack.c.bf16 %v1354_v8, %v1352_v48  ;;  %v1238_v12 = vpop.f32.mrb[4].mxu1 }
 0x3a0   : > { %v1323_v2 = vadd.f32 %v3212_v43, %v1238_v12  ;;  %v1240_v3 = vpop.f32.mrb[5].mxu1  ;;  %2273 = vmatprep.mubr.bf16.mxu0 %v1383_v35 }
 0x3a1   : > { %v1324_v63 = vadd.f32 %v3214_v0, %v1240_v3  ;;  %v1242_v5 = vpop.f32.mrb[6].mxu1 }
 0x3a2   : > { %v1325_v39 = vadd.f32 %v3212_v43, %v1242_v5  ;;  %v1244_v1 = vpop.f32.mrb[7].mxu1  ;;  %v1355_v42 = vmax.f32 %v1323_v2, 0.0  ;;  %v2466_v2 = vld [vmem:[#allocation8 + $0x38] sm:$0xff]  }
 0x3a3   : > { %v1326_v6 = vadd.f32 %v3214_v0, %v1244_v1  ;;  %v1356_v26 = vmax.f32 %v1324_v63, 0.0 }
 0x3a4   : > { %v1357_v54 = vmax.f32 %v1325_v39, 0.0 }
 0x3a5   : > { %v1358_v10 = vmax.f32 %v1326_v6, 0.0 }
 0x3a6   : > { %v1385_v11 = vpack.c.bf16 %v1357_v54, %v1355_v42 }
 0x3a7   : > { %v3226_v62 = vpack.c.bf16 %v1358_v10, %v1356_v26  ;;  %v1248_v34 = vpop.f32.mrb[8].mxu1 }
 0x3a8   : > { %v1327_v15 = vadd.f32 %v3212_v43, %v1248_v34  ;;  %v1250_v16 = vpop.f32.mrb[9].mxu1  ;;  %2274 = vmatmul.mubr.bf16.vlgmr.msra.gmra.mrb[16].mxu0 %v1385_v11 }
 0x3a9   : > { %v1328_v17 = vadd.f32 %v3214_v0, %v1250_v16  ;;  %v1252_v44 = vpop.f32.mrb[10].mxu1  ;;  %2290 = vmatpush3.bf16.msra.mxu0 %v2459_v33 }
 0x3aa   : > { %v1329_v18 = vadd.f32 %v3212_v43, %v1252_v44  ;;  %v1254_v19 = vpop.f32.mrb[11].mxu1  ;;  %2291 = vmatprep.subr.bf16.mxu0 %v2460_v14  ;;  %v1359_v20 = vmax.f32 %v1327_v15, 0.0 }
 0x3ab   : > { %v1330_v7 = vadd.f32 %v3214_v0, %v1254_v19  ;;  %v1360_v23 = vmax.f32 %v1328_v17, 0.0 }
 0x3ac   : > { %v1361_v22 = vmax.f32 %v1329_v18, 0.0 }
 0x3ad   : > { %v1362_v4 = vmax.f32 %v1330_v7, 0.0  ;;  %2292 = vmatpush3.bf16.msra.mxu0 %v2460_v14 }
 0x3ae   : > { %v1387_v52 = vpack.c.bf16 %v1361_v22, %v1359_v20  ;;  %2293 = vmatprep.subr.bf16.mxu0 %v2461_v38 }
 0x3af   : > { %v3232_v25 = vpack.c.bf16 %v1362_v4, %v1360_v23  ;;  %v1258_v61 = vpop.f32.mrb[12].mxu1 }
 0x3b0   : > { %v1331_v46 = vadd.f32 %v3212_v43, %v1258_v61  ;;  %v1260_v27 = vpop.f32.mrb[13].mxu1  ;;  %2277 = vmatprep.mubr.bf16.mxu0 %v1387_v52 }
 0x3b1   : > { %v1332_v28 = vadd.f32 %v3214_v0, %v1260_v27  ;;  %v1262_v29 = vpop.f32.mrb[14].mxu1  ;;  %2294 = vmatpush3.bf16.msra.mxu0 %v2461_v38 }
 0x3b2   : > { %v1333_v40 = vadd.f32 %v3212_v43, %v1262_v29  ;;  %v1264_v30 = vpop.f32.mrb[15].mxu1  ;;  %2295 = vmatprep.subr.bf16.mxu0 %v2462_v56  ;;  %v1363_v45 = vmax.f32 %v1331_v46, 0.0 }
 0x3b3   : > { %v1334_v53 = vadd.f32 %v3214_v0, %v1264_v30  ;;  %v1364_v33 = vmax.f32 %v1332_v28, 0.0 }
 0x3b4   : > { %v1365_v32 = vmax.f32 %v1333_v40, 0.0 }
 0x3b5   : > { %v1366_v21 = vmax.f32 %v1334_v53, 0.0  ;;  %2296 = vmatpush3.bf16.msra.mxu0 %v2462_v56 }
 0x3b6   : > { %v1389_v49 = vpack.c.bf16 %v1365_v32, %v1363_v45  ;;  %2297 = vmatprep.subr.bf16.mxu0 %v2463_v31 }
 0x3b7   : > { %v3238_v41 = vpack.c.bf16 %v1366_v21, %v1364_v33  ;;  %v1268_v9 = vpop.f32.mrb[16].mxu1 }
 0x3b8   : > { %v1335_v47 = vadd.f32 %v3212_v43, %v1268_v9  ;;  %v1270_v50 = vpop.f32.mrb[17].mxu1  ;;  %2278 = vmatmul.mubr.bf16.gmra.mrb[20].mxu0 %v1389_v49 }
 0x3b9   : > { %v1336_v51 = vadd.f32 %v3214_v0, %v1270_v50  ;;  %v1272_v13 = vpop.f32.mrb[18].mxu1  ;;  %2298 = vmatpush3.bf16.msra.mxu0 %v2463_v31 }
 0x3ba   : > { %v1337_v57 = vadd.f32 %v3212_v43, %v1272_v13  ;;  %v1274_v24 = vpop.f32.mrb[19].mxu1  ;;  %2299 = vmatprep.subr.bf16.mxu0 %v2464_v60  ;;  %v1367_v55 = vmax.f32 %v1335_v47, 0.0 }
 0x3bb   : > { %v1338_v59 = vadd.f32 %v3214_v0, %v1274_v24  ;;  %v1368_v8 = vmax.f32 %v1336_v51, 0.0 }
 0x3bc   : > { %v1369_v48 = vmax.f32 %v1337_v57, 0.0 }
 0x3bd   : > { %v1370_v35 = vmax.f32 %v1338_v59, 0.0  ;;  %2300 = vmatpush3.bf16.msra.mxu0 %v2464_v60 }
 0x3be   : > { %v1391_v12 = vpack.c.bf16 %v1369_v48, %v1367_v55  ;;  %2301 = vmatprep.subr.bf16.mxu0 %v2465_v58 }
 0x3bf   : > { %v1392_v3 = vpack.c.bf16 %v1370_v35, %v1368_v8  ;;  %v1278_v63 = vpop.f32.mrb[20].mxu1 }
 0x3c0   : > { %v1339_v5 = vadd.f32 %v3212_v43, %v1278_v63  ;;  %v1280_v39 = vpop.f32.mrb[21].mxu1  ;;  %2281 = vmatprep.mubr.bf16.mxu0 %v1391_v12 }
 0x3c1   : > { %v1340_v1 = vadd.f32 %v3214_v0, %v1280_v39  ;;  %v1282_v6 = vpop.f32.mrb[22].mxu1  ;;  %2302 = vmatpush3.bf16.msra.mxu0 %v2465_v58 }
 0x3c2   : > { %v1341_v42 = vadd.f32 %v3212_v43, %v1282_v6  ;;  %v1284_v54 = vpop.f32.mrb[23].mxu1  ;;  %2303 = vmatprep.subr.bf16.mxu0 %v2466_v2  ;;  %v1371_v10 = vmax.f32 %v1339_v5, 0.0 }
 0x3c3   : > { %v1342_v26 = vadd.f32 %v3214_v0, %v1284_v54  ;;  %v1372_v14 = vmax.f32 %v1340_v1, 0.0 }
 0x3c4   : > { %v1373_v11 = vmax.f32 %v1341_v42, 0.0 }
 0x3c5   : > { %v1374_v34 = vmax.f32 %v1342_v26, 0.0  ;;  %2304 = vmatpush3.bf16.msra.mxu0 %v2466_v2 }
 0x3c6   : > { %v1393_v15 = vpack.c.bf16 %v1373_v11, %v1371_v10 }
 0x3c7   : > { %v1394_v16 = vpack.c.bf16 %v1374_v34, %v1372_v14  ;;  %v1288_v17 = vpop.f32.mrb[24].mxu1 }
 0x3c8   : > { %v1343_v44 = vadd.f32 %v3212_v43, %v1288_v17  ;;  %v1290_v18 = vpop.f32.mrb[25].mxu1  ;;  %2282 = vmatmul.mubr.bf16.gmra.mrb[24].mxu0 %v1393_v15 }
 0x3c9   : > { %v1344_v19 = vadd.f32 %v3214_v0, %v1290_v18  ;;  %v1292_v38 = vpop.f32.mrb[26].mxu1 }
 0x3ca   : > { %v1345_v7 = vadd.f32 %v3212_v43, %v1292_v38  ;;  %v1294_v20 = vpop.f32.mrb[27].mxu1  ;;  %v1375_v23 = vmax.f32 %v1343_v44, 0.0 }
 0x3cb   : > { %v1346_v22 = vadd.f32 %v3214_v0, %v1294_v20  ;;  %v1376_v52 = vmax.f32 %v1344_v19, 0.0 }
 0x3cc   : > { %v1377_v4 = vmax.f32 %v1345_v7, 0.0 }
 0x3cd   : > { %v1378_v56 = vmax.f32 %v1346_v22, 0.0 }
 0x3ce   : > { %v1395_v61 = vpack.c.bf16 %v1377_v4, %v1375_v23 }
 0x3cf   : > { %v1396_v46 = vpack.c.bf16 %v1378_v56, %v1376_v52  ;;  %v1298_v27 = vpop.f32.mrb[28].mxu1 }
 0x3d0   : > { %v1347_v28 = vadd.f32 %v3212_v43, %v1298_v27  ;;  %v1300_v29 = vpop.f32.mrb[29].mxu1  ;;  %2285 = vmatprep.mubr.bf16.mxu0 %v1395_v61 }
 0x3d1   : > { %v1348_v40 = vadd.f32 %v3214_v0, %v1300_v29  ;;  %v1302_v30 = vpop.f32.mrb[30].mxu1 }
 0x3d2   : > { %v1349_v31 = vadd.f32 %v3212_v43, %v1302_v30  ;;  %v1304_v53 = vpop.f32.mrb[31].mxu1  ;;  %v1379_v32 = vmax.f32 %v1347_v28, 0.0  ;;  %v3263_v43 = vld [vmem:[%s3507_s9] ss:$0 sm:$0xff] }
 0x3d3   : > { %v1350_v45 = vadd.f32 %v3214_v0, %v1304_v53  ;;  %v1380_v21 = vmax.f32 %v1348_v40, 0.0 }
 0x3d4   : > { %v1381_v33 = vmax.f32 %v1349_v31, 0.0 }
 0x3d5   : > { %v1382_v49 = vmax.f32 %v1350_v45, 0.0 }
 0x3d6   : > { %v1397_v60 = vpack.c.bf16 %v1381_v33, %v1379_v32 }
 0x3d7   : > { %v1398_v9 = vpack.c.bf16 %v1382_v49, %v1380_v21 }
 0x3d8   : > { %2286 = vmatmul.mubr.bf16.gmra.mrb[28].mxu0 %v1397_v60 }
 0x3d9   : > { %2305 = vmatprep.mubr.bf16.mxu0 %v3220_v37 }
 0x3e0   : > { %2306 = vmatmul.mubr.bf16.vlgmr.msra.gmra.mrb[32].mxu0 %v3226_v62 }
 0x3e1   : > { %2309 = vmatprep.mubr.bf16.mxu0 %v3232_v25  ;;  %v3270_v25 = vld [vmem:[%s3507_s9 + $0x2] ss:$0 sm:$0xff] }
 0x3e8   : > { %2310 = vmatmul.mubr.bf16.gmra.mrb[36].mxu0 %v3238_v41 }
 0x3e9   : > { %2313 = vmatprep.mubr.bf16.mxu0 %v1392_v3 }
 0x3f0   : > { %2314 = vmatmul.mubr.bf16.gmra.mrb[40].mxu0 %v1394_v16 }
 0x3f1   : > { %2317 = vmatprep.mubr.bf16.mxu0 %v1396_v46 }
 0x3f8   : > { %2318 = vmatmul.mubr.bf16.gmra.mrb[44].mxu0 %v1398_v9  ;;  %v3302_v9 = vld [vmem:[%s3507_s9 + $0x1] ss:$0 sm:$0xff] }
 0x47b   : > { %v2275_v0 = vpop.f32.mrb[16].mxu0 }
 0x47c   : > { %v1511_v47 = vadd.f32 %v2275_v0, %v3263_v43  ;;  %v1502_v50 = vpop.f32.mrb[17].mxu0 }
 0x47d   : > { %v1503_v37 = vadd.f32 %v3263_v43, %v1502_v50  ;;  %v2276_v62 = vpop.f32.mrb[18].mxu0 }
 0x47e   : > { %v1567_v41 = vmax.f32 %v1511_v47, 0.0  ;;  %v1514_v51 = vadd.f32 %v2276_v62, %v3263_v43  ;;  %v1505_v13 = vpop.f32.mrb[19].mxu0 }
 0x47f   : > { %v1506_v57 = vadd.f32 %v3263_v43, %v1505_v13  ;;  %v1565_v24 = vmax.f32 %v1503_v37, 0.0  ;;  %v3311_v13 = vld [vmem:[%s3507_s9 + $0x3] ss:$0 sm:$0xff] }
 0x480   : > { %v1568_v58 = vmax.f32 %v1514_v51, 0.0  ;;  %v1770_v59 = vmul.f32 %v3270_v25, %v1567_v41 }
 0x481   : > { %v1566_v55 = vmax.f32 %v1506_v57, 0.0  ;;  %v1768_v8 = vmul.f32 %v3270_v25, %v1565_v24 }
 0x482   : > { %1788 = vadd.xlane.f32.xlu0 %v1770_v59  ;;  %v1771_v48 = vmul.f32 %v3270_v25, %v1568_v58 }
 0x483   : > { %v1769_v35 = vmul.f32 %v3270_v25, %v1566_v55 }
 0x484   : > { %1790 = vadd.xlane.f32.xlu1 %v1771_v48 }
 0x486   : > { %1784 = vadd.xlane.f32.xlu0 %v1768_v8 }
 0x488   : > { %1786 = vadd.xlane.f32.xlu1 %v1769_v35 }
 0x48b   : > { %v2279_v12 = vpop.f32.mrb[20].mxu0 }
 0x48c   : > { %v1527_v2 = vadd.f32 %v2279_v12, %v3263_v43  ;;  %v1518_v3 = vpop.f32.mrb[21].mxu0 }
 0x48d   : > { %v1519_v63 = vadd.f32 %v3263_v43, %v1518_v3  ;;  %v2280_v5 = vpop.f32.mrb[22].mxu0 }
 0x48e   : > { %v1571_v39 = vmax.f32 %v1527_v2, 0.0  ;;  %v1530_v1 = vadd.f32 %v2280_v5, %v3263_v43  ;;  %v1521_v6 = vpop.f32.mrb[23].mxu0 }
 0x48f   : > { %v1522_v42 = vadd.f32 %v3263_v43, %v1521_v6  ;;  %v1569_v54 = vmax.f32 %v1519_v63, 0.0 }
 0x490   : > { %v1572_v26 = vmax.f32 %v1530_v1, 0.0  ;;  %v1774_v10 = vmul.f32 %v3270_v25, %v1571_v39 }
 0x491   : > { %v1570_v11 = vmax.f32 %v1522_v42, 0.0  ;;  %v1772_v34 = vmul.f32 %v3270_v25, %v1569_v54 }
 0x492   : > { %1796 = vadd.xlane.f32.xlu0 %v1774_v10  ;;  %v1775_v14 = vmul.f32 %v3270_v25, %v1572_v26 }
 0x493   : > { %v1773_v15 = vmul.f32 %v3270_v25, %v1570_v11 }
 0x494   : > { %1798 = vadd.xlane.f32.xlu1 %v1775_v14 }
 0x496   : > { %1792 = vadd.xlane.f32.xlu0 %v1772_v34 }
 0x498   : > { %1794 = vadd.xlane.f32.xlu1 %v1773_v15 }
 0x49b   : > { %v2283_v16 = vpop.f32.mrb[24].mxu0 }
 0x49c   : > { %v1543_v17 = vadd.f32 %v2283_v16, %v3263_v43  ;;  %v1534_v44 = vpop.f32.mrb[25].mxu0 }
 0x49d   : > { %v1535_v18 = vadd.f32 %v3263_v43, %v1534_v44  ;;  %v2284_v19 = vpop.f32.mrb[26].mxu0 }
 0x49e   : > { %v1575_v38 = vmax.f32 %v1543_v17, 0.0  ;;  %v1546_v7 = vadd.f32 %v2284_v19, %v3263_v43  ;;  %v1537_v20 = vpop.f32.mrb[27].mxu0 }
 0x49f   : > { %v1538_v22 = vadd.f32 %v3263_v43, %v1537_v20  ;;  %v1573_v23 = vmax.f32 %v1535_v18, 0.0 }
 0x4a0   : > { %v1576_v4 = vmax.f32 %v1546_v7, 0.0  ;;  %v1778_v52 = vmul.f32 %v3270_v25, %v1575_v38 }
 0x4a1   : > { %v1574_v56 = vmax.f32 %v1538_v22, 0.0  ;;  %v1776_v46 = vmul.f32 %v3270_v25, %v1573_v23 }
 0x4a2   : > { %1804 = vadd.xlane.f32.xlu0 %v1778_v52  ;;  %v1779_v61 = vmul.f32 %v3270_v25, %v1576_v4 }
 0x4a3   : > { %v1777_v27 = vmul.f32 %v3270_v25, %v1574_v56 }
 0x4a4   : > { %1806 = vadd.xlane.f32.xlu1 %v1779_v61 }
 0x4a6   : > { %1800 = vadd.xlane.f32.xlu0 %v1776_v46 }
 0x4a8   : > { %1802 = vadd.xlane.f32.xlu1 %v1777_v27 }
 0x4ab   : > { %v2287_v28 = vpop.f32.mrb[28].mxu0 }
 0x4ac   : > { %v1559_v29 = vadd.f32 %v2287_v28, %v3263_v43  ;;  %v1550_v40 = vpop.f32.mrb[29].mxu0 }
 0x4ad   : > { %v1551_v30 = vadd.f32 %v3263_v43, %v1550_v40  ;;  %v2288_v31 = vpop.f32.mrb[30].mxu0 }
 0x4ae   : > { %v1579_v53 = vmax.f32 %v1559_v29, 0.0  ;;  %v1562_v45 = vadd.f32 %v2288_v31, %v3263_v43  ;;  %v1553_v32 = vpop.f32.mrb[31].mxu0 }
 0x4af   : > { %v1554_v33 = vadd.f32 %v3263_v43, %v1553_v32  ;;  %v1577_v21 = vmax.f32 %v1551_v30, 0.0 }
 0x4b0   : > { %v1580_v49 = vmax.f32 %v1562_v45, 0.0  ;;  %v1782_v60 = vmul.f32 %v3270_v25, %v1579_v53 }
 0x4b1   : > { %v1578_v0 = vmax.f32 %v1554_v33, 0.0  ;;  %v1780_v43 = vmul.f32 %v3270_v25, %v1577_v21 }
 0x4b2   : > { %1812 = vadd.xlane.f32.xlu0 %v1782_v60  ;;  %v1783_v47 = vmul.f32 %v3270_v25, %v1580_v49 }
 0x4b3   : > { %v2307_v50 = vpop.f32.mrb[32].mxu0  ;;  %v1781_v59 = vmul.f32 %v3270_v25, %v1578_v0 }
 0x4b4   : > { %v1693_v37 = vadd.f32 %v2307_v50, %v3302_v9  ;;  %1814 = vadd.xlane.f32.xlu1 %v1783_v47  ;;  %v1684_v62 = vpop.f32.mrb[33].mxu0 }
 0x4b5   : > { %v1685_v41 = vadd.f32 %v3302_v9, %v1684_v62  ;;  %v2308_v51 = vpop.f32.mrb[34].mxu0 }
 0x4b6   : > { %v1749_v57 = vmax.f32 %v1693_v37, 0.0  ;;  %v1696_v24 = vadd.f32 %v2308_v51, %v3302_v9  ;;  %v1687_v58 = vpop.f32.mrb[35].mxu0  ;;  %1808 = vadd.xlane.f32.xlu0 %v1780_v43 }
 0x4b7   : > { %v1688_v55 = vadd.f32 %v3302_v9, %v1687_v58  ;;  %v1747_v48 = vmax.f32 %v1685_v41, 0.0 }
 0x4b8   : > { %v1750_v8 = vmax.f32 %v1696_v24, 0.0  ;;  %1810 = vadd.xlane.f32.xlu1 %v1781_v59  ;;  %v1841_v35 = vmul.f32 %v3311_v13, %v1749_v57 }
 0x4b9   : > { %v1748_v12 = vmax.f32 %v1688_v55, 0.0  ;;  %v1839_v39 = vmul.f32 %v3311_v13, %v1747_v48 }
 0x4ba   : > { %1859 = vadd.xlane.f32.xlu0 %v1841_v35  ;;  %v1842_v2 = vmul.f32 %v3311_v13, %v1750_v8 }
 0x4bb   : > { %v2311_v3 = vpop.f32.mrb[36].mxu0  ;;  %v1840_v26 = vmul.f32 %v3311_v13, %v1748_v12 }
 0x4bc   : > { %v1709_v63 = vadd.f32 %v2311_v3, %v3302_v9  ;;  %v1700_v5 = vpop.f32.mrb[37].mxu0  ;;  %1861 = vadd.xlane.f32.xlu1 %v1842_v2 }
 0x4bd   : > { %v1701_v25 = vadd.f32 %v3302_v9, %v1700_v5  ;;  %v2312_v1 = vpop.f32.mrb[38].mxu0  ;;  %v3359_v5 = vand.u32 127, %v1309_v36 }
 0x4be   : > { %v1753_v6 = vmax.f32 %v1709_v63, 0.0  ;;  %v1712_v42 = vadd.f32 %v2312_v1, %v3302_v9  ;;  %v1703_v54 = vpop.f32.mrb[39].mxu0  ;;  %1855 = vadd.xlane.f32.xlu0 %v1839_v39  ;;  %v3356_v63 = vstv %s1816_s19  ;;  %v3365_v1 = vstv %s2174_s24 }
 0x4bf   : > { %v1704_v10 = vadd.f32 %v3302_v9, %v1703_v54  ;;  %v1751_v11 = vmax.f32 %v1701_v25, 0.0  ;;  %vm1907_vm2 = vcmp.eq.s32.totalorder %v3359_v5, 0  ;;  %vm1924_vm3 = vcmp.eq.s32.totalorder %v3359_v5, 1 }
 0x4c0   : > { %v1754_v14 = vmax.f32 %v1712_v42, 0.0  ;;  %1857 = vadd.xlane.f32.xlu1 %v1840_v26  ;;  %v1845_v34 = vmul.f32 %v3311_v13, %v1753_v6 }
 0x4c1   : > { %v1752_v15 = vmax.f32 %v1704_v10, 0.0  ;;  %v1843_v19 = vmul.f32 %v3311_v13, %v1751_v11 }
 0x4c2   : > { %1867 = vadd.xlane.f32.xlu0 %v1845_v34  ;;  %v1846_v16 = vmul.f32 %v3311_v13, %v1754_v14 }
 0x4c3   : > { %v2315_v17 = vpop.f32.mrb[40].mxu0  ;;  %v1844_v4 = vmul.f32 %v3311_v13, %v1752_v15 }
 0x4c4   : > { %v1725_v44 = vadd.f32 %v2315_v17, %v3302_v9  ;;  %v1716_v18 = vpop.f32.mrb[41].mxu0  ;;  %1869 = vadd.xlane.f32.xlu1 %v1846_v16 }
 0x4c5   : > { %v1717_v38 = vadd.f32 %v3302_v9, %v1716_v18  ;;  %v2316_v7 = vpop.f32.mrb[42].mxu0 }
 0x4c6   : > { %v1757_v20 = vmax.f32 %v1725_v44, 0.0  ;;  %v1728_v22 = vadd.f32 %v2316_v7, %v3302_v9  ;;  %v1719_v23 = vpop.f32.mrb[43].mxu0  ;;  %1863 = vadd.xlane.f32.xlu0 %v1843_v19 }
 0x4c7   : > { %v1720_v52 = vadd.f32 %v3302_v9, %v1719_v23  ;;  %v1755_v56 = vmax.f32 %v1717_v38, 0.0 }
 0x4c8   : > { %v1758_v61 = vmax.f32 %v1728_v22, 0.0  ;;  %1865 = vadd.xlane.f32.xlu1 %v1844_v4  ;;  %v1849_v46 = vmul.f32 %v3311_v13, %v1757_v20 }
 0x4c9   : > { %v1756_v27 = vmax.f32 %v1720_v52, 0.0  ;;  %v1847_v30 = vmul.f32 %v3311_v13, %v1755_v56 }
 0x4ca   : > { %1875 = vadd.xlane.f32.xlu0 %v1849_v46  ;;  %v1850_v28 = vmul.f32 %v3311_v13, %v1758_v61 }
 0x4cb   : > { %v2319_v29 = vpop.f32.mrb[44].mxu0  ;;  %v1848_v33 = vmul.f32 %v3311_v13, %v1756_v27 }
 0x4cc   : > { %1877 = vadd.xlane.f32.xlu1 %v1850_v28  ;;  %v1732_v40 = vpop.f32.mrb[45].mxu0  ;;  %v1741_v31 = vadd.f32 %v2319_v29, %v3302_v9 }
 0x4cd   : > { %v1733_v53 = vadd.f32 %v3302_v9, %v1732_v40  ;;  %v2320_v45 = vpop.f32.mrb[46].mxu0 }
 0x4ce   : > { %1871 = vadd.xlane.f32.xlu0 %v1847_v30  ;;  %v1735_v32 = vpop.f32.mrb[47].mxu0  ;;  %v1744_v49 = vadd.f32 %v2320_v45, %v3302_v9  ;;  %v1761_v0 = vmax.f32 %v1741_v31, 0.0 }
 0x4cf   : > { %v1759_v21 = vmax.f32 %v1733_v53, 0.0  ;;  %v1736_v60 = vadd.f32 %v3302_v9, %v1735_v32 }
 0x4d0   : > { %1873 = vadd.xlane.f32.xlu1 %v1848_v33  ;;  %v1762_v37 = vmax.f32 %v1744_v49, 0.0  ;;  %v1853_v43 = vmul.f32 %v3311_v13, %v1761_v0 }
 0x4d1   : > { %v1760_v47 = vmax.f32 %v1736_v60, 0.0  ;;  %v1851_v50 = vmul.f32 %v3311_v13, %v1759_v21 }
 0x4d2   : > { %v1854_v41 = vmul.f32 %v3311_v13, %v1762_v37 }
 0x4d3   : > { %1879 = vadd.xlane.f32.xlu0 %v1851_v50  ;;  %v1852_v62 = vmul.f32 %v3311_v13, %v1760_v47 }
 0x4d5   : > { %1881 = vadd.xlane.f32.xlu1 %v1852_v62 }
 0x4d7   : > { %1883 = vadd.xlane.f32.xlu0 %v1853_v43 }
 0x4d9   : > { %1885 = vadd.xlane.f32.xlu1 %v1854_v41 }
 0x50f   : > { %v1789_v51 = vpop.xlane.xlu0 %1788 }
 0x510   : > { %v1820_v6 = vadd.f32 %v3356_v63, %v1789_v51 }
 0x511   : > { %v1791_v57 = vpop.xlane.xlu1 %1790 }
 0x512   : > { %v1821_v54 = vadd.f32 %v3356_v63, %v1791_v57  ;;  %v1910_v36 = vsel %vm1907_vm2, %v1820_v6, 0.0 }
 0x513   : > { %v1785_v24 = vpop.xlane.xlu0 %1784 }
 0x514   : > { %v1818_v11 = vadd.f32 %v3356_v63, %v1785_v24  ;;  %v1911_v17 = vsel %vm1907_vm2, %v1821_v54, 0.0 }
 0x515   : > { %v1787_v9 = vpop.xlane.xlu1 %1786 }
 0x516   : > { %v1819_v44 = vadd.f32 %v3356_v63, %v1787_v9  ;;  %v1908_v20 = vsel %vm1907_vm2, %v1818_v11, 0.0 }
 0x518   : > { %v1909_v61 = vsel %vm1907_vm2, %v1819_v44, 0.0 }
 0x51f   : > { %v1797_v58 = vpop.xlane.xlu0 %1796 }
 0x520   : > { %v1824_v22 = vadd.f32 %v3356_v63, %v1797_v58 }
 0x521   : > { %v1799_v59 = vpop.xlane.xlu1 %1798 }
 0x522   : > { %v1825_v46 = vadd.f32 %v3356_v63, %v1799_v59  ;;  %v1914_v30 = vsel %vm1907_vm2, %v1824_v22, 0.0 }
 0x523   : > { %v1793_v55 = vpop.xlane.xlu0 %1792 }
 0x524   : > { %v1822_v31 = vadd.f32 %v3356_v63, %v1793_v55  ;;  %v1915_v21 = vsel %vm1907_vm2, %v1825_v46, 0.0 }
 0x525   : > { %v1795_v48 = vpop.xlane.xlu1 %1794 }
 0x526   : > { %v1823_v49 = vadd.f32 %v3356_v63, %v1795_v48  ;;  %v1912_v37 = vsel %vm1907_vm2, %v1822_v31, 0.0 }
 0x528   : > { %v1913_v24 = vsel %vm1907_vm2, %v1823_v49, 0.0 }
 0x52f   : > { %v3344_v8 = vpop.xlane.xlu0 %1804 }
 0x530   : > { %v1828_v62 = vadd.f32 %v3356_v63, %v3344_v8 }
 0x531   : > { %v3346_v35 = vpop.xlane.xlu1 %1806 }
 0x532   : > { %v1829_v9 = vadd.f32 %v3356_v63, %v3346_v35  ;;  %v1918_v8 = vsel %vm1907_vm2, %v1828_v62, 0.0 }
 0x533   : > { %v3348_v12 = vpop.xlane.xlu0 %1800 }
 0x534   : > { %v1826_v6 = vadd.f32 %v3356_v63, %v3348_v12 }
 0x535   : > { %v3350_v2 = vpop.xlane.xlu1 %1802 }
 0x53f   : > { %v3352_v13 = vpop.xlane.xlu0 %1812 }
 0x541   : > { %v3354_v3 = vpop.xlane.xlu1 %1814 }
 0x542   : > { %v1833_v46 = vadd.f32 %v3356_v63, %v3354_v3 }
 0x543   : > { %v3361_v39 = vpop.xlane.xlu0 %1808 }
 0x545   : > { %v3363_v25 = vpop.xlane.xlu1 %1810 }
 0x547   : > { %v1860_v42 = vpop.xlane.xlu0 %1859 }
 0x548   : > { %v1891_v26 = vadd.f32 %v3365_v1, %v1860_v42 }
 0x549   : > { %v1862_v10 = vpop.xlane.xlu1 %1861 }
 0x54a   : > { %v1927_v14 = vsel %vm1924_vm3, %v1891_v26, 0.0  ;;  %v1892_v34 = vadd.f32 %v3365_v1, %v1862_v10  ;;  %v1919_v10 = vsel %vm1907_vm2, %v1829_v9, 0.0 }
 0x54b   : > { %v1943_v15 = vadd.f32 %v1927_v14, %v1910_v36  ;;  %v1856_v16 = vpop.xlane.xlu0 %1855  ;;  %v1827_v36 = vadd.f32 %v3356_v63, %v3350_v2  ;;  %v1830_v2 = vadd.f32 %v3356_v63, %v3361_v39  ;;  %v1832_v39 = vadd.f32 %v3356_v63, %v3352_v13 }
 0x54c   : > { %v1928_v18 = vsel %vm1924_vm3, %v1892_v34, 0.0  ;;  %v1889_v19 = vadd.f32 %v3365_v1, %v1856_v16 }
 0x54d   : > { %1959 = vst [vmem:[%s3379_s26 + $0x10] sm:$0xff] %v1943_v15  ;;  %v1944_v38 = vadd.f32 %v1928_v18, %v1911_v17  ;;  %v1858_v7 = vpop.xlane.xlu1 %1857  ;;  %v1916_v15 = vsel %vm1907_vm2, %v1826_v6, 0.0  ;;  %v1917_v18 = vsel %vm1907_vm2, %v1827_v36, 0.0 }
 0x54e   : > { %v1925_v23 = vsel %vm1924_vm3, %v1889_v19, 0.0  ;;  %v1890_v4 = vadd.f32 %v3365_v1, %v1858_v7  ;;  %v1831_v7 = vadd.f32 %v3356_v63, %v3363_v25 }
 0x54f   : > { %1960 = vst [vmem:[%s3379_s26 + $0x18] sm:$0xff] %v1944_v38  ;;  %v1941_v52 = vadd.f32 %v1925_v23, %v1908_v20  ;;  %v1868_v56 = vpop.xlane.xlu0 %1867 }
 0x550   : > { %v1926_v27 = vsel %vm1924_vm3, %v1890_v4, 0.0  ;;  %v1895_v28 = vadd.f32 %v3365_v1, %v1868_v56  ;;  %v1920_v4 = vsel %vm1907_vm2, %v1830_v2, 0.0  ;;  %v1921_v13 = vsel %vm1907_vm2, %v1831_v7, 0.0 }
 0x551   : > { %1957 = vst [vmem:[%s3379_s26] sm:$0xff] %v1941_v52  ;;  %v1942_v29 = vadd.f32 %v1926_v27, %v1909_v61  ;;  %v1870_v40 = vpop.xlane.xlu1 %1869 }
 0x552   : > { %v1931_v53 = vsel %vm1924_vm3, %v1895_v28, 0.0  ;;  %v1896_v45 = vadd.f32 %v3365_v1, %v1870_v40 }
 0x553   : > { %1958 = vst [vmem:[%s3379_s26 + $0x8] sm:$0xff] %v1942_v29  ;;  %v1947_v32 = vadd.f32 %v1931_v53, %v1914_v30  ;;  %v1864_v33 = vpop.xlane.xlu0 %1863  ;;  %v1922_v30 = vsel %vm1907_vm2, %v1832_v39, 0.0  ;;  %v1923_v53 = vsel %vm1907_vm2, %v1833_v46, 0.0 }
 0x554   : > { %v1932_v60 = vsel %vm1924_vm3, %v1896_v45, 0.0  ;;  %v1893_v0 = vadd.f32 %v3365_v1, %v1864_v33 }
 0x555   : > { %1963 = vst [vmem:[%s3379_s26 + $0x30] sm:$0xff] %v1947_v32  ;;  %v1948_v47 = vadd.f32 %v1932_v60, %v1915_v21  ;;  %v1866_v50 = vpop.xlane.xlu1 %1865 }
 0x556   : > { %v1929_v43 = vsel %vm1924_vm3, %v1893_v0, 0.0  ;;  %v1894_v41 = vadd.f32 %v3365_v1, %v1866_v50 }
 0x557   : > { %1964 = vst [vmem:[%s3379_s26 + $0x38] sm:$0xff] %v1948_v47  ;;  %v1945_v51 = vadd.f32 %v1929_v43, %v1912_v37  ;;  %v1876_v57 = vpop.xlane.xlu0 %1875 }
 0x558   : > { %v1930_v58 = vsel %vm1924_vm3, %v1894_v41, 0.0  ;;  %v1899_v59 = vadd.f32 %v3365_v1, %v1876_v57 }
 0x559   : > { %1961 = vst [vmem:[%s3379_s26 + $0x20] sm:$0xff] %v1945_v51  ;;  %v1946_v55 = vadd.f32 %v1930_v58, %v1913_v24  ;;  %v1878_v48 = vpop.xlane.xlu1 %1877 }
 0x55a   : > { %v1935_v42 = vsel %vm1924_vm3, %v1899_v59, 0.0  ;;  %v1900_v35 = vadd.f32 %v3365_v1, %v1878_v48 }
 0x55b   : > { %1962 = vst [vmem:[%s3379_s26 + $0x28] sm:$0xff] %v1946_v55  ;;  %v1951_v54 = vadd.f32 %v1935_v42, %v1918_v8  ;;  %v1872_v26 = vpop.xlane.xlu0 %1871 }
 0x55c   : > { %v1936_v11 = vsel %vm1924_vm3, %v1900_v35, 0.0  ;;  %v1897_v12 = vadd.f32 %v3365_v1, %v1872_v26 }
 0x55d   : > { %1967 = vst [vmem:[%s3379_s26 + $0x50] sm:$0xff] %v1951_v54  ;;  %v1952_v14 = vadd.f32 %v1936_v11, %v1919_v10  ;;  %v1874_v34 = vpop.xlane.xlu1 %1873 }
 0x55e   : > { %v1933_v16 = vsel %vm1924_vm3, %v1897_v12, 0.0  ;;  %v1898_v17 = vadd.f32 %v3365_v1, %v1874_v34 }
 0x55f   : > { %1968 = vst [vmem:[%s3379_s26 + $0x58] sm:$0xff] %v1952_v14  ;;  %v1949_v44 = vadd.f32 %v1933_v16, %v1916_v15 }
 0x560   : > { %v1934_v19 = vsel %vm1924_vm3, %v1898_v17, 0.0  ;;  %v1880_v38 = vpop.xlane.xlu0 %1879 }
 0x561   : > { %1965 = vst [vmem:[%s3379_s26 + $0x40] sm:$0xff] %v1949_v44  ;;  %v1950_v20 = vadd.f32 %v1934_v19, %v1917_v18  ;;  %v1901_v22 = vadd.f32 %v3365_v1, %v1880_v38 }
 0x562   : > { %v1882_v23 = vpop.xlane.xlu1 %1881 }
 0x563   : > { %1966 = vst [vmem:[%s3379_s26 + $0x48] sm:$0xff] %v1950_v20  ;;  %v1937_v52 = vsel %vm1924_vm3, %v1901_v22, 0.0  ;;  %v1902_v56 = vadd.f32 %v3365_v1, %v1882_v23 }
 0x564   : > { %v1953_v25 = vadd.f32 %v1937_v52, %v1920_v4  ;;  %v1884_v61 = vpop.xlane.xlu0 %1883 }
 0x565   : > { %v1938_v27 = vsel %vm1924_vm3, %v1902_v56, 0.0  ;;  %v1903_v28 = vadd.f32 %v3365_v1, %v1884_v61 }
 0x566   : > { %1969 = vst [vmem:[%s3379_s26 + $0x60] sm:$0xff] %v1953_v25  ;;  %v1954_v29 = vadd.f32 %v1938_v27, %v1921_v13  ;;  %v1886_v40 = vpop.xlane.xlu1 %1885 }
 0x567   : > { %v1939_v31 = vsel %vm1924_vm3, %v1903_v28, 0.0  ;;  %v1904_v3 = vadd.f32 %v3365_v1, %v1886_v40 }
 0x568   : > { %1970 = vst [vmem:[%s3379_s26 + $0x68] sm:$0xff] %v1954_v29  ;;  %v1955_v63 = vadd.f32 %v1939_v31, %v1922_v30 }
 0x569   : > { %v1940_v45 = vsel %vm1924_vm3, %v1904_v3, 0.0 }
 0x56a   : > { %1971 = vst [vmem:[%s3379_s26 + $0x70] sm:$0xff] %v1955_v63  ;;  %v1956_v32 = vadd.f32 %v1940_v45, %v1923_v53 }
 0x56c   : > { %1972 = vst [vmem:[%s3379_s26 + $0x78] sm:$0xff] %v1956_v32 }
 0x56d PF: > { %s25_s17 = sadd.s32 1, %s2680_s17  }
 0x56e   : > { %p22_p7 = scmp.ge.s32.totalorder %s25_s17, 4  }
 0x570   :  { %24 = sbr.rel (!%p22_p7) target bundleno = 6 (0x6), region = 119 }
 0x577   :  { %1995 = vsyncpa [#allocation3], 1 }
 0x578   :  { %1997 = vsyncpa [#allocation3 + $0x1], 1 }
 0x579   :  { %1998 = vsyncpa [#allocation6], 1 }
 0x57a   :  { %1999 = vsyncpa [#allocation9], 1 }
 0x57b   :  { %2000 = vsyncpa [#allocation4], 1 }
 0x57c   :  { %2002 = vsyncpa [#allocation4 + $0x1], 1 }

</bundles_post_ra>
